<compile_context>
chip_gen: v7x
topology: tpu7x:2x2x1
jax: 0.10.0
libtpu: 0.0.40
codegen_flags: <defaults>
</compile_context>

<pallas_src>
import jax
import jax.numpy as jnp
from jax.experimental import pallas as pl
from jax.experimental.pallas import tpu as pltpu


def _mha_head_kernel(xq_ref, xk_ref, xv_ref,
                     wq_ref, bq_ref, wk_ref, bk_ref, wv_ref, bv_ref,
                     wo_ref, bo_ref,
                     out_ref, attn_ref,
                     acc_ref):
    """One (batch, head) grid step."""
    h = pl.program_id(1)
    cd = xq_ref.dtype  # MXU operand dtype (bf16 on v6e/v7x)

    @pl.when(h == 0)
    def _init():
        acc_ref[...] = jnp.zeros_like(acc_ref)

    # Per-head projections: (N, E) @ (E, D) -> (N, D), f32 accumulation.
    # Weights are pre-transposed in the wrapper; softmax scale is folded into wq/bq.
    qp = jnp.dot(xq_ref[0], wq_ref[0], preferred_element_type=jnp.float32) + bq_ref[0]
    kp = jnp.dot(xk_ref[0], wk_ref[0], preferred_element_type=jnp.float32) + bk_ref[0]
    vp = jnp.dot(xv_ref[0], wv_ref[0], preferred_element_type=jnp.float32) + bv_ref[0]

    # Scores: contract the D axes directly (no explicit kh.T / relayout).
    dots = jax.lax.dot_general(
        qp.astype(cd), kp.astype(cd),
        dimension_numbers=(((1,), (1,)), ((), ())),
        preferred_element_type=jnp.float32)                      # (N, N)

    # Softmax (f32, max-subtracted); divide goes to the EUP via approx reciprocal.
    m = jnp.max(dots, axis=-1, keepdims=True)
    e = jnp.exp(dots - m)
    attn = e * pl.reciprocal(jnp.sum(e, axis=-1, keepdims=True), approx=True)
    attn_ref[0, 0] = attn.astype(attn_ref.dtype)
    # TODO(synk): dropout with p>0 (PRNG masking) not implemented; module default p=0.0 is identity.

    # Context and this head's slice of the output projection, accumulated over heads.
    ctx = jnp.dot(attn.astype(cd), vp.astype(cd),
                  preferred_element_type=jnp.float32)            # (N, D)
    acc_ref[...] += jnp.dot(ctx.astype(cd), wo_ref[0],
                            preferred_element_type=jnp.float32)  # (N, E)

    @pl.when(h == pl.num_programs(1) - 1)
    def _finish():
        out_ref[0] = (acc_ref[...] + bo_ref[...]).astype(out_ref.dtype)


def prepare_params(params, num_heads, compute_dtype=jnp.bfloat16):
    """Pre-transpose (out,in)->(in,out), fold softmax scale into Wq/bq, split the
    head axis to the front so per-head blocks span full trailing dims, cast to
    the MXU compute dtype (biases stay f32 — they are added to f32 accumulators)."""
    wq, bq, wk, bk, wv, bv, wo, bo = params
    E = wq.shape[0]
    D = E // num_heads
    scale = float(D) ** (-0.5)

    def split_in_proj(w, s=1.0):
        # (E_out, E_in) -> (E_in, E_out) -> (H, E_in, D)
        wt = (w * s).T
        return wt.reshape(E, num_heads, D).transpose(1, 0, 2).astype(compute_dtype)

    wq_h = split_in_proj(wq, scale)
    wk_h = split_in_proj(wk)
    wv_h = split_in_proj(wv)
    bq_h = (bq * scale).reshape(num_heads, 1, D).astype(jnp.float32)
    bk_h = bk.reshape(num_heads, 1, D).astype(jnp.float32)
    bv_h = bv.reshape(num_heads, 1, D).astype(jnp.float32)
    # out = ctx @ wo.T = sum_h ctx_h @ wo.T[h*D:(h+1)*D, :]
    wo_h = wo.T.reshape(num_heads, D, E).astype(compute_dtype)
    bo_r = bo.reshape(1, E).astype(jnp.float32)
    return wq_h, bq_h, wk_h, bk_h, wv_h, bv_h, wo_h, bo_r


def multihead_attention(q, k, v, params, *, num_heads, compute_dtype=jnp.bfloat16):
    """Pallas forward.  q, k, v: (B, N, E).  Returns (out (B,N,E), attn (B,H,N,N))."""
    B, N, E = q.shape
    assert E % num_heads == 0
    D = E // num_heads

    wq_h, bq_h, wk_h, bk_h, wv_h, bv_h, wo_h, bo_r = prepare_params(
        params, num_heads, compute_dtype)
    qc = q.astype(compute_dtype)
    kc = k.astype(compute_dtype)
    vc = v.astype(compute_dtype)

    x_spec = pl.BlockSpec((1, N, E), lambda b, h: (b, 0, 0))      # resident across h
    w_spec = pl.BlockSpec((1, E, D), lambda b, h: (h, 0, 0))
    bvec_spec = pl.BlockSpec((1, 1, D), lambda b, h: (h, 0, 0))
    wo_spec = pl.BlockSpec((1, D, E), lambda b, h: (h, 0, 0))
    bo_spec = pl.BlockSpec((1, E), lambda b, h: (0, 0))

    grid_spec = pltpu.PrefetchScalarGridSpec(
        num_scalar_prefetch=0,
        grid=(B, num_heads),
        in_specs=[x_spec, x_spec, x_spec,
                  w_spec, bvec_spec, w_spec, bvec_spec, w_spec, bvec_spec,
                  wo_spec, bo_spec],
        out_specs=[
            pl.BlockSpec((1, N, E), lambda b, h: (b, 0, 0)),       # accumulated over h
            pl.BlockSpec((1, 1, N, N), lambda b, h: (b, h, 0, 0)),
        ],
        scratch_shapes=[pltpu.VMEM((N, E), jnp.float32)],
    )

    itemsize_c = jnp.dtype(compute_dtype).itemsize
    cost = pl.CostEstimate(
        flops=8 * B * N * E * E + 4 * B * num_heads * N * N * D,
        transcendentals=B * num_heads * N * N,
        bytes_accessed=(3 * B * N * E * itemsize_c            # activations in
                        + B * num_heads * 4 * E * D * itemsize_c  # weights
                        + B * N * E * q.dtype.itemsize            # out
                        + B * num_heads * N * N * 4))             # attn writeback
    # TODO(synk): for very long sequences add a q-tile grid axis (and a separate
    # K/V projection pass) to bound the (N,N) score tile; not needed at these sizes.

    out, attn = pl.pallas_call(
        _mha_head_kernel,
        out_shape=(
            jax.ShapeDtypeStruct((B, N, E), q.dtype),
            jax.ShapeDtypeStruct((B, num_heads, N, N), jnp.float32),
        ),
        grid_spec=grid_spec,
        compiler_params=pltpu.CompilerParams(
            dimension_semantics=("parallel", "arbitrary")),
        cost_estimate=cost,
    )(qc, kc, vc, wq_h, bq_h, wk_h, bk_h, wv_h, bv_h, wo_h, bo_r)
    return out, attn


def init_params(key, embed_dim):
    """Mirror the PyTorch module init: q/k/v xavier_uniform weight + zero bias,
    out_proj default Linear weight + zero bias."""
    kq, kk, kv, ko = jax.random.split(key, 4)
    xav = (6.0 / (embed_dim + embed_dim)) ** 0.5
    wq = jax.random.uniform(kq, (embed_dim, embed_dim), jnp.float32, -xav, xav)
    wk = jax.random.uniform(kk, (embed_dim, embed_dim), jnp.float32, -xav, xav)
    wv = jax.random.uniform(kv, (embed_dim, embed_dim), jnp.float32, -xav, xav)
    bound = 1.0 / (embed_dim ** 0.5)
    wo = jax.random.uniform(ko, (embed_dim, embed_dim), jnp.float32, -bound, bound)
    zb = jnp.zeros((embed_dim,), jnp.float32)
    return (wq, zb, wk, zb, wv, zb, wo, zb)


def reference(q, k, v, params, *, num_heads, compute_dtype=jnp.bfloat16):
    """Pure-JAX mirror of the non-flash forward path under mixed precision
    (matches the kernel's bf16-operand / f32-accumulate policy)."""
    B, N, E = q.shape
    D = E // num_heads
    scale = float(D) ** (-0.5)
    wq, bq, wk, bk, wv, bv, wo, bo = params
    cd = compute_dtype
    qc, kc, vc = q.astype(cd), k.astype(cd), v.astype(cd)
    wq_s = (wq * scale).T.astype(cd)
    wk_t, wv_t, wo_t = wk.T.astype(cd), wv.T.astype(cd), wo.T.astype(cd)

    qp = jnp.dot(qc, wq_s, preferred_element_type=jnp.float32) + bq * scale
    kp = jnp.dot(kc, wk_t, preferred_element_type=jnp.float32) + bk
    vp = jnp.dot(vc, wv_t, preferred_element_type=jnp.float32) + bv

    def split(t):  # b n (h d) -> b h n d
        return t.reshape(B, N, num_heads, D).transpose(0, 2, 1, 3)

    qh, kh, vh = split(qp), split(kp), split(vp)
    dots = jnp.einsum('bhnd,bhmd->bhnm', qh.astype(cd), kh.astype(cd),
                      preferred_element_type=jnp.float32)
    attn = jax.nn.softmax(dots, axis=-1)
    ctx = jnp.einsum('bhnm,bhmd->bhnd', attn.astype(cd), vh.astype(cd),
                     preferred_element_type=jnp.float32)
    ctx = ctx.transpose(0, 2, 1, 3).reshape(B, N, E)
    out = jnp.dot(ctx.astype(cd), wo_t, preferred_element_type=jnp.float32) + bo
    return out.astype(q.dtype), attn


if __name__ == "__main__":
    # Small but lane-dense shapes: batch=2, seq=128, embed=256, heads=8 (head_dim=32).
    B, N, E, H = 2, 128, 256, 8
    key = jax.random.PRNGKey(0)
    kq, kk, kv, kp = jax.random.split(key, 4)
    q = jax.random.normal(kq, (B, N, E), jnp.float32)
    k = jax.random.normal(kk, (B, N, E), jnp.float32)
    v = jax.random.normal(kv, (B, N, E), jnp.float32)
    params = init_params(kp, E)

    out, attn = multihead_attention(q, k, v, params, num_heads=H)
    jax.block_until_ready((out, attn))

    ref_out, ref_attn = reference(q, k, v, params, num_heads=H)
    assert out.shape == (B, N, E) and attn.shape == (B, H, N, N)
    assert jnp.allclose(attn, ref_attn, atol=5e-3, rtol=1e-2), "attn mismatch"
    assert jnp.allclose(out, ref_out, atol=3e-2, rtol=3e-2), "out mismatch"
    print("KERNEL_OK")
</pallas_src>

<mosaic_0001>
module attributes {stable_mosaic.version = 11 : i64} {
  func.func @_mha_head_kernel(%arg0: i32, %arg1: i32, %arg2: memref<1x128x256xbf16, #tpu.memory_space<vmem>>, %arg3: memref<1x128x256xbf16, #tpu.memory_space<vmem>>, %arg4: memref<1x128x256xbf16, #tpu.memory_space<vmem>>, %arg5: memref<1x256x32xbf16, #tpu.memory_space<vmem>>, %arg6: memref<1x1x32xf32, #tpu.memory_space<vmem>>, %arg7: memref<1x256x32xbf16, #tpu.memory_space<vmem>>, %arg8: memref<1x1x32xf32, #tpu.memory_space<vmem>>, %arg9: memref<1x256x32xbf16, #tpu.memory_space<vmem>>, %arg10: memref<1x1x32xf32, #tpu.memory_space<vmem>>, %arg11: memref<1x32x256xbf16, #tpu.memory_space<vmem>>, %arg12: memref<1x256xf32, #tpu.memory_space<vmem>>, %arg13: memref<1x128x256xf32, #tpu.memory_space<vmem>>, %arg14: memref<1x1x128x128xf32, #tpu.memory_space<vmem>>, %arg15: memref<128x256xf32, #tpu.memory_space<vmem>>) attributes {dimension_semantics = [#tpu.dimension_semantics<parallel>, #tpu.dimension_semantics<arbitrary>], iteration_bounds = array<i64: 2, 8>, scalar_prefetch = 0 : i64, scratch_operands = 1 : i64, tpu.core_type = #tpu.core_type<tc>, window_params = [{transform_indices = @transform_0, window_bounds = array<i64: 1, 128, 256>}, {transform_indices = @transform_1, window_bounds = array<i64: 1, 128, 256>}, {transform_indices = @transform_2, window_bounds = array<i64: 1, 128, 256>}, {transform_indices = @transform_3, window_bounds = array<i64: 1, 256, 32>}, {transform_indices = @transform_4, window_bounds = array<i64: 1, 1, 32>}, {transform_indices = @transform_5, window_bounds = array<i64: 1, 256, 32>}, {transform_indices = @transform_6, window_bounds = array<i64: 1, 1, 32>}, {transform_indices = @transform_7, window_bounds = array<i64: 1, 256, 32>}, {transform_indices = @transform_8, window_bounds = array<i64: 1, 1, 32>}, {transform_indices = @transform_9, window_bounds = array<i64: 1, 32, 256>}, {pipeline_mode = #tpu.pipeline_mode<synchronous>, transform_indices = @transform_10, window_bounds = array<i64: 1, 256>}, {transform_indices = @transform_11, window_bounds = array<i64: 1, 128, 256>}, {transform_indices = @transform_12, window_bounds = array<i64: 1, 1, 128, 128>}]} {
    %c0_i32 = arith.constant 0 : i32
    %0 = arith.cmpi eq, %arg1, %c0_i32 : i32
    %1 = arith.extui %0 : i1 to i32
    %c0_i32_0 = arith.constant 0 : i32
    %2 = arith.cmpi ne, %1, %c0_i32_0 : i32
    scf.if %2 {
      %cst_46 = arith.constant 0.000000e+00 : f32
      %59 = vector.broadcast %cst_46 : f32 to vector<128x256xf32>
      %c0_47 = arith.constant 0 : index
      %c0_48 = arith.constant 0 : index
      %60 = vector.load %arg15[%c0_47, %c0_48] : memref<128x256xf32, #tpu.memory_space<vmem>>, vector<128x256xf32>
      tpu.vector_store %arg15[%c0_47, %c0_48], %59 {strides = array<i32>} : memref<128x256xf32, #tpu.memory_space<vmem>>, vector<128x256xf32>,
    } else {
    }
    %c0 = arith.constant 0 : index
    %c0_1 = arith.constant 0 : index
    %c0_2 = arith.constant 0 : index
    %3 = vector.load %arg2[%c0, %c0_1, %c0_2] : memref<1x128x256xbf16, #tpu.memory_space<vmem>>, vector<1x128x256xbf16>
    %4 = vector.shape_cast %3 : vector<1x128x256xbf16> to vector<128x256xbf16>
    %c0_3 = arith.constant 0 : index
    %c0_4 = arith.constant 0 : index
    %c0_5 = arith.constant 0 : index
    %5 = vector.load %arg5[%c0_3, %c0_4, %c0_5] : memref<1x256x32xbf16, #tpu.memory_space<vmem>>, vector<1x256x32xbf16>
    %6 = vector.shape_cast %5 : vector<1x256x32xbf16> to vector<256x32xbf16>
    %cst = arith.constant dense<0.000000e+00> : vector<128x32xf32>
    %7 = tpu.matmul %4, %6, %cst {dimension_numbers = #tpu.dot_dimension_numbers<[1], [0], [0], [1], [0, 0, 1, 1], [], []>} : vector<128x256xbf16>, vector<256x32xbf16>, vector<128x32xf32> -> vector<128x32xf32>
    %c0_6 = arith.constant 0 : index
    %c0_7 = arith.constant 0 : index
    %c0_8 = arith.constant 0 : index
    %8 = vector.load %arg6[%c0_6, %c0_7, %c0_8] : memref<1x1x32xf32, #tpu.memory_space<vmem>>, vector<1x1x32xf32>
    %9 = vector.shape_cast %8 : vector<1x1x32xf32> to vector<1x32xf32>
    %10 = vector.broadcast %9 : vector<1x32xf32> to vector<128x32xf32>
    %11 = arith.addf %7, %10 : vector<128x32xf32>
    %c0_9 = arith.constant 0 : index
    %c0_10 = arith.constant 0 : index
    %c0_11 = arith.constant 0 : index
    %12 = vector.load %arg3[%c0_9, %c0_10, %c0_11] : memref<1x128x256xbf16, #tpu.memory_space<vmem>>, vector<1x128x256xbf16>
    %13 = vector.shape_cast %12 : vector<1x128x256xbf16> to vector<128x256xbf16>
    %c0_12 = arith.constant 0 : index
    %c0_13 = arith.constant 0 : index
    %c0_14 = arith.constant 0 : index
    %14 = vector.load %arg7[%c0_12, %c0_13, %c0_14] : memref<1x256x32xbf16, #tpu.memory_space<vmem>>, vector<1x256x32xbf16>
    %15 = vector.shape_cast %14 : vector<1x256x32xbf16> to vector<256x32xbf16>
    %cst_15 = arith.constant dense<0.000000e+00> : vector<128x32xf32>
    %16 = tpu.matmul %13, %15, %cst_15 {dimension_numbers = #tpu.dot_dimension_numbers<[1], [0], [0], [1], [0, 0, 1, 1], [], []>} : vector<128x256xbf16>, vector<256x32xbf16>, vector<128x32xf32> -> vector<128x32xf32>
    %c0_16 = arith.constant 0 : index
    %c0_17 = arith.constant 0 : index
    %c0_18 = arith.constant 0 : index
    %17 = vector.load %arg8[%c0_16, %c0_17, %c0_18] : memref<1x1x32xf32, #tpu.memory_space<vmem>>, vector<1x1x32xf32>
    %18 = vector.shape_cast %17 : vector<1x1x32xf32> to vector<1x32xf32>
    %19 = vector.broadcast %18 : vector<1x32xf32> to vector<128x32xf32>
    %20 = arith.addf %16, %19 : vector<128x32xf32>
    %c0_19 = arith.constant 0 : index
    %c0_20 = arith.constant 0 : index
    %c0_21 = arith.constant 0 : index
    %21 = vector.load %arg4[%c0_19, %c0_20, %c0_21] : memref<1x128x256xbf16, #tpu.memory_space<vmem>>, vector<1x128x256xbf16>
    %22 = vector.shape_cast %21 : vector<1x128x256xbf16> to vector<128x256xbf16>
    %c0_22 = arith.constant 0 : index
    %c0_23 = arith.constant 0 : index
    %c0_24 = arith.constant 0 : index
    %23 = vector.load %arg9[%c0_22, %c0_23, %c0_24] : memref<1x256x32xbf16, #tpu.memory_space<vmem>>, vector<1x256x32xbf16>
    %24 = vector.shape_cast %23 : vector<1x256x32xbf16> to vector<256x32xbf16>
    %cst_25 = arith.constant dense<0.000000e+00> : vector<128x32xf32>
    %25 = tpu.matmul %22, %24, %cst_25 {dimension_numbers = #tpu.dot_dimension_numbers<[1], [0], [0], [1], [0, 0, 1, 1], [], []>} : vector<128x256xbf16>, vector<256x32xbf16>, vector<128x32xf32> -> vector<128x32xf32>
    %c0_26 = arith.constant 0 : index
    %c0_27 = arith.constant 0 : index
    %c0_28 = arith.constant 0 : index
    %26 = vector.load %arg10[%c0_26, %c0_27, %c0_28] : memref<1x1x32xf32, #tpu.memory_space<vmem>>, vector<1x1x32xf32>
    %27 = vector.shape_cast %26 : vector<1x1x32xf32> to vector<1x32xf32>
    %28 = vector.broadcast %27 : vector<1x32xf32> to vector<128x32xf32>
    %29 = arith.addf %25, %28 : vector<128x32xf32>
    %30 = arith.truncf %11 : vector<128x32xf32> to vector<128x32xbf16>
    %31 = arith.truncf %20 : vector<128x32xf32> to vector<128x32xbf16>
    %cst_29 = arith.constant dense<0.000000e+00> : vector<128x128xf32>
    %32 = tpu.matmul %30, %31, %cst_29 {dimension_numbers = #tpu.dot_dimension_numbers<[1], [1], [0], [0], [0, 0, 1, 0], [], []>} : vector<128x32xbf16>, vector<128x32xbf16>, vector<128x128xf32> -> vector<128x128xf32>
    %cst_30 = arith.constant dense<0xFF800000> : vector<128xf32>
    %33 = vector.multi_reduction <maximumf>, %32, %cst_30 [1] : vector<128x128xf32> to vector<128xf32>
    %34 = vector.shape_cast %33 : vector<128xf32> to vector<128x1xf32>
    %35 = vector.broadcast %34 : vector<128x1xf32> to vector<128x128xf32>
    %36 = arith.subf %32, %35 : vector<128x128xf32>
    %37 = math.exp %36 : vector<128x128xf32>
    %cst_31 = arith.constant dense<0.000000e+00> : vector<128xf32>
    %38 = vector.multi_reduction <add>, %37, %cst_31 [1] : vector<128x128xf32> to vector<128xf32>
    %39 = vector.shape_cast %38 : vector<128xf32> to vector<128x1xf32>
    %40 = tpu.reciprocal %39 {approx = true} : vector<128x1xf32> -> vector<128x1xf32>
    %41 = vector.broadcast %40 : vector<128x1xf32> to vector<128x128xf32>
    %42 = arith.mulf %37, %41 : vector<128x128xf32>
    %c0_32 = arith.constant 0 : index
    %c0_33 = arith.constant 0 : index
    %c0_34 = arith.constant 0 : index
    %c0_35 = arith.constant 0 : index
    %43 = vector.load %arg14[%c0_32, %c0_33, %c0_34, %c0_35] : memref<1x1x128x128xf32, #tpu.memory_space<vmem>>, vector<1x1x128x128xf32>
    %44 = vector.shape_cast %43 : vector<1x1x128x128xf32> to vector<128x128xf32>
    %45 = vector.shape_cast %42 : vector<128x128xf32> to vector<1x1x128x128xf32>
    tpu.vector_store %arg14[%c0_32, %c0_33, %c0_34, %c0_35], %45 {strides = array<i32>} : memref<1x1x128x128xf32, #tpu.memory_space<vmem>>, vector<1x1x128x128xf32>,
    %46 = arith.truncf %42 : vector<128x128xf32> to vector<128x128xbf16>
    %47 = arith.truncf %29 : vector<128x32xf32> to vector<128x32xbf16>
    %cst_36 = arith.constant dense<0.000000e+00> : vector<128x32xf32>
    %48 = tpu.matmul %46, %47, %cst_36 {dimension_numbers = #tpu.dot_dimension_numbers<[1], [0], [0], [1], [0, 0, 1, 1], [], []>} : vector<128x128xbf16>, vector<128x32xbf16>, vector<128x32xf32> -> vector<128x32xf32>
    %c0_37 = arith.constant 0 : index
    %c0_38 = arith.constant 0 : index
    %49 = vector.load %arg15[%c0_37, %c0_38] : memref<128x256xf32, #tpu.memory_space<vmem>>, vector<128x256xf32>
    %50 = arith.truncf %48 : vector<128x32xf32> to vector<128x32xbf16>
    %c0_39 = arith.constant 0 : index
    %c0_40 = arith.constant 0 : index
    %c0_41 = arith.constant 0 : index
    %51 = vector.load %arg11[%c0_39, %c0_40, %c0_41] : memref<1x32x256xbf16, #tpu.memory_space<vmem>>, vector<1x32x256xbf16>
    %52 = vector.shape_cast %51 : vector<1x32x256xbf16> to vector<32x256xbf16>
    %cst_42 = arith.constant dense<0.000000e+00> : vector<128x256xf32>
    %53 = tpu.matmul %50, %52, %cst_42 {dimension_numbers = #tpu.dot_dimension_numbers<[1], [0], [0], [1], [0, 0, 1, 1], [], []>} : vector<128x32xbf16>, vector<32x256xbf16>, vector<128x256xf32> -> vector<128x256xf32>
    %54 = arith.addf %49, %53 : vector<128x256xf32>
    %c0_43 = arith.constant 0 : index
    %c0_44 = arith.constant 0 : index
    %55 = vector.load %arg15[%c0_43, %c0_44] : memref<128x256xf32, #tpu.memory_space<vmem>>, vector<128x256xf32>
    tpu.vector_store %arg15[%c0_43, %c0_44], %54 {strides = array<i32>} : memref<128x256xf32, #tpu.memory_space<vmem>>, vector<128x256xf32>,
    %c7_i32 = arith.constant 7 : i32
    %56 = arith.cmpi eq, %arg1, %c7_i32 : i32
    %57 = arith.extui %56 : i1 to i32
    %c0_i32_45 = arith.constant 0 : i32
    %58 = arith.cmpi ne, %57, %c0_i32_45 : i32
    scf.if %58 {
      %c0_46 = arith.constant 0 : index
      %c0_47 = arith.constant 0 : index
      %59 = vector.load %arg15[%c0_46, %c0_47] : memref<128x256xf32, #tpu.memory_space<vmem>>, vector<128x256xf32>
      %c0_48 = arith.constant 0 : index
      %c0_49 = arith.constant 0 : index
      %60 = vector.load %arg12[%c0_48, %c0_49] : memref<1x256xf32, #tpu.memory_space<vmem>>, vector<1x256xf32>
      %61 = vector.broadcast %60 : vector<1x256xf32> to vector<128x256xf32>
      %62 = arith.addf %59, %61 : vector<128x256xf32>
      %c0_50 = arith.constant 0 : index
      %c0_51 = arith.constant 0 : index
      %c0_52 = arith.constant 0 : index
      %63 = vector.load %arg13[%c0_50, %c0_51, %c0_52] : memref<1x128x256xf32, #tpu.memory_space<vmem>>, vector<1x128x256xf32>
      %64 = vector.shape_cast %63 : vector<1x128x256xf32> to vector<128x256xf32>
      %65 = vector.shape_cast %62 : vector<128x256xf32> to vector<1x128x256xf32>
      tpu.vector_store %arg13[%c0_50, %c0_51, %c0_52], %65 {strides = array<i32>} : memref<1x128x256xf32, #tpu.memory_space<vmem>>, vector<1x128x256xf32>,
    } else {
    }
    return
  }
  func.func @transform_0(%arg0: i32, %arg1: i32) -> (i32, i32, i32) {
    %c0_i32 = arith.constant 0 : i32
    %c0_i32_0 = arith.constant 0 : i32
    %c0_i32_1 = arith.constant 0 : i32
    return %arg0, %c0_i32, %c0_i32_0 : i32, i32, i32
  }
  func.func @transform_1(%arg0: i32, %arg1: i32) -> (i32, i32, i32) {
    %c0_i32 = arith.constant 0 : i32
    %c0_i32_0 = arith.constant 0 : i32
    %c0_i32_1 = arith.constant 0 : i32
    return %arg0, %c0_i32, %c0_i32_0 : i32, i32, i32
  }
  func.func @transform_2(%arg0: i32, %arg1: i32) -> (i32, i32, i32) {
    %c0_i32 = arith.constant 0 : i32
    %c0_i32_0 = arith.constant 0 : i32
    %c0_i32_1 = arith.constant 0 : i32
    return %arg0, %c0_i32, %c0_i32_0 : i32, i32, i32
  }
  func.func @transform_3(%arg0: i32, %arg1: i32) -> (i32, i32, i32) {
    %c0_i32 = arith.constant 0 : i32
    %c0_i32_0 = arith.constant 0 : i32
    %c0_i32_1 = arith.constant 0 : i32
    return %arg1, %c0_i32, %c0_i32_0 : i32, i32, i32
  }
  func.func @transform_4(%arg0: i32, %arg1: i32) -> (i32, i32, i32) {
    %c0_i32 = arith.constant 0 : i32
    %c0_i32_0 = arith.constant 0 : i32
    %c0_i32_1 = arith.constant 0 : i32
    return %arg1, %c0_i32, %c0_i32_0 : i32, i32, i32
  }
  func.func @transform_5(%arg0: i32, %arg1: i32) -> (i32, i32, i32) {
    %c0_i32 = arith.constant 0 : i32
    %c0_i32_0 = arith.constant 0 : i32
    %c0_i32_1 = arith.constant 0 : i32
    return %arg1, %c0_i32, %c0_i32_0 : i32, i32, i32
  }
  func.func @transform_6(%arg0: i32, %arg1: i32) -> (i32, i32, i32) {
    %c0_i32 = arith.constant 0 : i32
    %c0_i32_0 = arith.constant 0 : i32
    %c0_i32_1 = arith.constant 0 : i32
    return %arg1, %c0_i32, %c0_i32_0 : i32, i32, i32
  }
  func.func @transform_7(%arg0: i32, %arg1: i32) -> (i32, i32, i32) {
    %c0_i32 = arith.constant 0 : i32
    %c0_i32_0 = arith.constant 0 : i32
    %c0_i32_1 = arith.constant 0 : i32
    return %arg1, %c0_i32, %c0_i32_0 : i32, i32, i32
  }
  func.func @transform_8(%arg0: i32, %arg1: i32) -> (i32, i32, i32) {
    %c0_i32 = arith.constant 0 : i32
    %c0_i32_0 = arith.constant 0 : i32
    %c0_i32_1 = arith.constant 0 : i32
    return %arg1, %c0_i32, %c0_i32_0 : i32, i32, i32
  }
  func.func @transform_9(%arg0: i32, %arg1: i32) -> (i32, i32, i32) {
    %c0_i32 = arith.constant 0 : i32
    %c0_i32_0 = arith.constant 0 : i32
    %c0_i32_1 = arith.constant 0 : i32
    return %arg1, %c0_i32, %c0_i32_0 : i32, i32, i32
  }
  func.func @transform_10(%arg0: i32, %arg1: i32) -> (i32, i32) {
    %c0_i32 = arith.constant 0 : i32
    %c0_i32_0 = arith.constant 0 : i32
    %c0_i32_1 = arith.constant 0 : i32
    return %c0_i32, %c0_i32_0 : i32, i32
  }
  func.func @transform_11(%arg0: i32, %arg1: i32) -> (i32, i32, i32) {
    %c0_i32 = arith.constant 0 : i32
    %c0_i32_0 = arith.constant 0 : i32
    %c0_i32_1 = arith.constant 0 : i32
    return %arg0, %c0_i32, %c0_i32_0 : i32, i32, i32
  }
  func.func @transform_12(%arg0: i32, %arg1: i32) -> (i32, i32, i32, i32) {
    %c0_i32 = arith.constant 0 : i32
    %c0_i32_0 = arith.constant 0 : i32
    %c0_i32_1 = arith.constant 0 : i32
    return %arg0, %arg1, %c0_i32, %c0_i32_0 : i32, i32, i32, i32
  }
}

</mosaic_0001>

<bundles_post_ra>
// kernel: tpu_custom_call.1
= control target key start
LH: loop header
LB: loop body
LE: loop exit
PB: predicated region body
PF: predicated region fallthrough
CT: control target
= control target key end

     0   :  { %s4443_s0 = inlined_call_operand.vmem [shape: bf16[2,128,256], index: 0, kind: input, shape index: {}]   ;;  %s4444_s1 = inlined_call_operand.vmem [shape: bf16[2,128,256], index: 1, kind: input, shape index: {}]   ;;  %s4445_s2 = inlined_call_operand.vmem [shape: bf16[2,128,256], index: 2, kind: input, shape index: {}]   ;;  %s4446_s3 = inlined_call_operand.vmem [shape: bf16[8,256,32], index: 3, kind: input, shape index: {}]   ;;  %s4447_s4 = inlined_call_operand.vmem [shape: f32[8,1,32], index: 4, kind: input, shape index: {}]   ;;  %s4448_s5 = inlined_call_operand.vmem [shape: bf16[8,256,32], index: 5, kind: input, shape index: {}]   ;;  %s4449_s6 = inlined_call_operand.vmem [shape: f32[8,1,32], index: 6, kind: input, shape index: {}]   ;;  %s4450_s7 = inlined_call_operand.vmem [shape: bf16[8,256,32], index: 7, kind: input, shape index: {}]   ;;  %s4451_s8 = inlined_call_operand.vmem [shape: f32[8,1,32], index: 8, kind: input, shape index: {}]   ;;  %s4452_s9 = inlined_call_operand.vmem [shape: bf16[8,32,256], index: 9, kind: input, shape index: {}]   ;;  %s4453_s10 = inlined_call_operand.vmem [shape: f32[1,256], index: 10, kind: input, shape index: {}]   ;;  %s4454_s11 = inlined_call_operand.hbm [shape: f32[2,128,256], index: 11, kind: output, shape index: {0}]   ;;  %s4455_s12 = inlined_call_operand.hbm [shape: f32[2,8,128,128], index: 12, kind: output, shape index: {1}]  }
   0x1   :  { %4478 = sst [smem:[#allocation26_spill]] %s4443_s0 }
   0x2   :  { %4479 = sst [smem:[#allocation27_spill]] %s4444_s1 }
   0x3   :  { %4480 = sst [smem:[#allocation28_spill]] %s4445_s2 }
   0x4   :  { %4481 = sst [smem:[#allocation29_spill]] %s4446_s3 }
   0x5   :  { %4482 = sst [smem:[#allocation30_spill]] %s4448_s5 }
   0x6   :  { %4483 = sst [smem:[#allocation31_spill]] %s4452_s9 }
   0x7   :  { %4484 = sst [smem:[#allocation32_spill]] %s4453_s10 }
   0x8   :  { %4485 = sst [smem:[#allocation33_spill]] %s4454_s11 }
   0x9   :  { %4486 = sst [smem:[#allocation34_spill]] %s4455_s12 }
   0xa   :  { %18 = vsyncpa [#allocation4], 0 }
   0xb   :  { %20 = vsyncpa [#allocation4 + $0x1], 0 }
   0xc   :  { %21 = vsyncpa [#allocation6], 0 }
   0xd   :  { %23 = vsyncpa [#allocation6 + $0x1], 0  ;;  %s3668_s21 = smov 0   ;;  %s3670_s22 = smov 0  }
   0xe   :  { %s3672_s23 = smov 0   ;;  %s3674_s24 = smov 0  }
   0xf   :  { %s3676_s25 = smov 0   ;;  %s3678_s26 = smov 0  }
  0x10   :  { %s3680_s27 = smov 0   ;;  %s3682_s28 = smov 0  }
  0x11   :  { %s3684_s29 = smov 0   ;;  %s3686_s30 = smov 0  }
  0x12   :  { %s3688_s13 = smov 0  }
  0x13 LB: > { %4487 = sst [smem:[#allocation9_spill]] %s3553_s21  ;;  %s2676_s14 = sadd.s32 4294967295, %s3593_s13   ;;  %s3593_s13 = sphi %s3688_s13, %s29_s13   ;;  %s3589_s30 = sphi %s3686_s30, %s4541_s30   ;;  %s3585_s29 = sphi %s3684_s29, %s4540_s29   ;;  %s3581_s28 = sphi %s3682_s28, %s4539_s28   ;;  %s3577_s27 = sphi %s3680_s27, %s4538_s27   ;;  %s3573_s26 = sphi %s3678_s26, %s4537_s26   ;;  %s3569_s25 = sphi %s3676_s25, %s4536_s25   ;;  %s3565_s24 = sphi %s3674_s24, %s4535_s24   ;;  %s3561_s23 = sphi %s3672_s23, %s4534_s23   ;;  %s3557_s22 = sphi %s3670_s22, %s4533_s22   ;;  %s3553_s21 = sphi %s3668_s21, %s4532_s21  }
  0x14   : > { %4488 = sst [smem:[#allocation10_spill]] %s3557_s22  ;;  %s2677_s15 = sadd.s32 4294967294, %s3593_s13  }
  0x15   : > { %4489 = sst [smem:[#allocation11_spill]] %s3561_s23  ;;  %s38_s16 = sadd.s32 1, %s3585_s29 }
  0x16   : > { %4490 = sst [smem:[#allocation12_spill]] %s3565_s24  ;;  %s41_s17 = sadd.s32 1, %s3589_s30 }
  0x17   : > { %4491 = sst [smem:[#allocation13_spill]] %s3569_s25  ;;  %p39_p0 = scmp.ge.s32.totalorder %s38_s16, 8 }
  0x18   : > { %4492 = sst [smem:[#allocation14_spill]] %s3573_s26  ;;  %s329_s18 = sadd.s32 1, %s3573_s26 }
  0x19   : > { %4493 = sst [smem:[#allocation15_spill]] %s3585_s29  ;;  %p339_p1 = scmp.ne.s32.totalorder %s3573_s26, %s3569_s25 }
  0x1a   : > { %4494 = sst [smem:[#allocation16_spill]] %s3589_s30  ;;  %p3730_p2 = scmp.eq.s32.totalorder %s2676_s14, 15 }
  0x1b   : > { %4495 = sst [smem:[#allocation17_spill]] %s3593_s13  ;;  %s4543_s16 = smov (%p39_p0, %s38_s16), 0 }
  0x1c   : > { %4497 = sst [smem:[#allocation18_spill]] %s4543_s16  ;;  %s4545_s17 = smov (!%p39_p0, %s41_s17), %s3589_s30 }
  0x1d   : > { %p3739_p3 = por %p3730_p2, %p339_p1  ;;  %p345_p4 = scmp.ne.s32.totalorder %s3569_s25, %s3565_s24 }
  0x1e   : > { %p43_p5 = scmp.ge.s32.totalorder %s4545_s17, 2  ;;  %p3745_p6 = scmp.eq.s32.totalorder %s2677_s15, 15 }
  0x1f   : > { %s4498_s20 = scalar_select %p3739_p3, 1, 0 }
  0x20   : > { %s353_s12 = ssub.s32 %s3585_s29, %s4543_s16  ;;  %s357_s11 = sadd.s32 1, %s3561_s23 }
  0x21   : > { %4499 = sst [smem:[#allocation19_spill]] %s4498_s20  ;;  %s4547_s17 = smov (%p43_p5, %s4545_s17), 0 }
  0x22   : > { %4501 = sst [smem:[#allocation20_spill]] %s4547_s17  ;;  %p3756_p7 = por %p3745_p6, %p345_p4 }
  0x23   : > { %p367_p8 = scmp.ne.s32.totalorder %s3561_s23, %s3557_s22  ;;  %s326_s24 = ssub.s32 %s3589_s30, %s4547_s17 }
  0x24   : > { %s4502_s10 = scalar_select %p3756_p7, 1, 0 }
  0x25   : > { %p373_p9 = scmp.ne.s32.totalorder %s3557_s22, %s3553_s21  ;;  %p327_p10 = scmp.eq.s32.totalorder %s326_s24, 0 }
  0x26   : > { %4503 = sst [smem:[#allocation21_spill]] %s4502_s10  ;;  %s354_s15 = sor.u32 %s353_s12, %s326_s24 }
  0x27   : > { %p355_p11 = scmp.eq.s32.totalorder %s354_s15, 0  ;;  %p3768_p12 = por %p367_p8, %p3730_p2 }
  0x28   : > { %s3773_s16 = scalar_select %p327_p10, %s3573_s26, %s329_s18  }
  0x29   : > { %s4504_s20 = scalar_select %p3768_p12, 1, 0 }
  0x2a   : > { %4506 = sst [smem:[#allocation23_spill]] %s3773_s16  ;;  %p3780_p13 = por %p373_p9, %p3745_p6 }
  0x2b   : > { %4505 = sst [smem:[#allocation22_spill]] %s4504_s20  ;;  %p2680_p0 = scmp.ge.s32.totalorder %s3593_s13, 1 }
  0x2c   : > { %s3776_s29 = scalar_select %p355_p11, %s3561_s23, %s357_s11  }
  0x2d   : > { %s4508_s9 = scalar_select %p3780_p13, 1, 0 }
  0x2e   : > { %4507 = sst [smem:[#allocation24_spill]] %s3776_s29  ;;  %p469_p1 = scmp.lt.s32.totalorder %s3593_s13, 17 }
  0x2f   : > { %4509 = sst [smem:[#allocation25_spill]] %s4508_s9 }
  0x30   : > { %p470_p4 = pnand %p2680_p0, %p469_p1 }
  0x31   : > { %s4466_s12 = sand.u32 (!%p470_p4), 1, %s3569_s25   ;;  %s4467_s11 = sand.u32 (!%p470_p4), 1, %s3557_s22  }
  0x32   : > { %473 = sbr.rel (%p470_p4) target bundleno = 1519 (0x5ef), region = 64  ;;  %s2681_s24 = sshll.u32 (!%p470_p4), %s4466_s12, 8 }
  0x33   : > { %s2682_s18 = sshll.u32 (!%p470_p4), %s4467_s11, 7  ;;  %p555_p2 = scmp.lt.s32.totalorder (!%p470_p4), %s3581_s28, 1 }
  0x34   : > { %p570_p5 = scmp.lt.s32.totalorder (!%p470_p4), %s3577_s27, 7  ;;  %s4510_s0 = sld [smem:[#allocation26_spill]] (!%p470_p4) }
  0x35   : > { %s4511_s1 = sld [smem:[#allocation27_spill]] (!%p470_p4)  ;;  %s4512_s2 = sld [smem:[#allocation28_spill]] (!%p470_p4) }
  0x36   : > { %s4513_s3 = sld [smem:[#allocation29_spill]] (!%p470_p4)  ;;  %s4514_s5 = sld [smem:[#allocation30_spill]] (!%p470_p4) }
  0x37   : > { %s4515_s25 = sld [smem:[#allocation31_spill]] (!%p470_p4)  ;;  %s3847_s22 = scalar_lea.vmem (!%p470_p4), [#allocation3], %s2681_s24 }
  0x38   : > { %p2697_p6 = scmp.ne.s32.totalorder (!%p470_p4), %s3577_s27, 0 }
  0x39   : > { %s556_s19 = scalar_select %p555_p2, %s3581_s28, 1 }
  0x3a   : > { %s3796_s14 = scalar_select %p570_p5, %s3577_s27, 7 }
  0x3b   : > { %s2827_s15 = sshll.u32 %s556_s19, 7  ;;  %603 = sbr.rel (%p2697_p6) target bundleno = 76 (0x4c), region = 68  ;;  %v3595_v0 = vmov (!%p2697_p6), 0.0  }
  0x3c   : > { %s3801_s16 = scalar_lea.vmem %s4510_s0, %s2827_s15  ;;  %s3806_s11 = scalar_lea.vmem %s4511_s1, %s2827_s15  ;;  %604 = vst [vmem:[#allocation2] sm:$0xff] (!%p2697_p6), %v3595_v0  ;;  %605 = vst [vmem:[#allocation2 + $0x8] sm:$0xff] (!%p2697_p6), %v3595_v0 }
  0x3d   : > { %s3811_s9 = scalar_lea.vmem %s4512_s2, %s2827_s15  ;;  %s2830_s21 = sshll.u32 %s3796_s14, 7  ;;  %606 = vst [vmem:[#allocation2 + $0x10] sm:$0xff] (!%p2697_p6), %v3595_v0  ;;  %607 = vst [vmem:[#allocation2 + $0x18] sm:$0xff] (!%p2697_p6), %v3595_v0 }
  0x3e   : > { %s3817_s19 = scalar_lea.vmem %s4513_s3, %s2830_s21  ;;  %s3826_s26 = scalar_lea.vmem %s4514_s5, %s2830_s21  ;;  %608 = vst [vmem:[#allocation2 + $0x20] sm:$0xff] (!%p2697_p6), %v3595_v0  ;;  %609 = vst [vmem:[#allocation2 + $0x28] sm:$0xff] (!%p2697_p6), %v3595_v0 }
  0x3f   : > { %s585_s23 = scalar_lea.vmem %s4449_s6, %s3796_s14  ;;  %s3835_s2 = scalar_lea.vmem %s4450_s7, %s2830_s21  ;;  %610 = vst [vmem:[#allocation2 + $0x30] sm:$0xff] (!%p2697_p6), %v3595_v0  ;;  %611 = vst [vmem:[#allocation2 + $0x38] sm:$0xff] (!%p2697_p6), %v3595_v0 }
  0x40   : > { %s593_s3 = scalar_lea.vmem %s4451_s8, %s3796_s14  ;;  %s2833_s20 = sshll.u32 %s3796_s14, 5  ;;  %612 = vst [vmem:[#allocation2 + $0x40] sm:$0xff] (!%p2697_p6), %v3595_v0  ;;  %613 = vst [vmem:[#allocation2 + $0x48] sm:$0xff] (!%p2697_p6), %v3595_v0 }
  0x41   : > { %s3845_s0 = scalar_lea.vmem %s4515_s25, %s2833_s20  ;;  %s3849_s5 = scalar_lea.vmem [#allocation5], %s2682_s18  ;;  %614 = vst [vmem:[#allocation2 + $0x50] sm:$0xff] (!%p2697_p6), %v3595_v0  ;;  %615 = vst [vmem:[#allocation2 + $0x58] sm:$0xff] (!%p2697_p6), %v3595_v0 }
  0x42   : > { %616 = vst [vmem:[#allocation2 + $0x60] sm:$0xff] %v3595_v0  ;;  %617 = vst [vmem:[#allocation2 + $0x68] sm:$0xff] %v3595_v0 }
  0x43   : > { %618 = vst [vmem:[#allocation2 + $0x70] sm:$0xff] %v3595_v0  ;;  %619 = vst [vmem:[#allocation2 + $0x78] sm:$0xff] %v3595_v0 }
  0x44   : > { %620 = vst [vmem:[#allocation2 + $0x80] sm:$0xff] %v3595_v0  ;;  %621 = vst [vmem:[#allocation2 + $0x88] sm:$0xff] %v3595_v0 }
  0x45   : > { %622 = vst [vmem:[#allocation2 + $0x90] sm:$0xff] %v3595_v0  ;;  %623 = vst [vmem:[#allocation2 + $0x98] sm:$0xff] %v3595_v0 }
  0x46   : > { %624 = vst [vmem:[#allocation2 + $0xa0] sm:$0xff] %v3595_v0  ;;  %625 = vst [vmem:[#allocation2 + $0xa8] sm:$0xff] %v3595_v0 }
  0x47   : > { %626 = vst [vmem:[#allocation2 + $0xb0] sm:$0xff] %v3595_v0  ;;  %627 = vst [vmem:[#allocation2 + $0xb8] sm:$0xff] %v3595_v0 }
  0x48   : > { %628 = vst [vmem:[#allocation2 + $0xc0] sm:$0xff] %v3595_v0  ;;  %629 = vst [vmem:[#allocation2 + $0xc8] sm:$0xff] %v3595_v0 }
  0x49   : > { %630 = vst [vmem:[#allocation2 + $0xd0] sm:$0xff] %v3595_v0  ;;  %631 = vst [vmem:[#allocation2 + $0xd8] sm:$0xff] %v3595_v0 }
  0x4a   : > { %632 = vst [vmem:[#allocation2 + $0xe0] sm:$0xff] %v3595_v0  ;;  %633 = vst [vmem:[#allocation2 + $0xe8] sm:$0xff] %v3595_v0 }
  0x4b   : > { %634 = vst [vmem:[#allocation2 + $0xf0] sm:$0xff] %v3595_v0  ;;  %635 = vst [vmem:[#allocation2 + $0xf8] sm:$0xff] %v3595_v0 }
  0x4c PF: > { %v3253_v1 = vld [vmem:[%s3817_s19 + $0x40] sm:$0xff]   ;;  %v3255_v3 = vld [vmem:[%s3817_s19 + $0x48] sm:$0xff]   ;;  %v3257_v5 = vld [vmem:[%s3817_s19 + $0x50] sm:$0xff]   ;;  %s4516_s25 = scalar_lea.vmem %s4447_s4, %s3796_s14  ;;  %vm1636_vm0 = vcmask 261120   ;;  %p2817_p8 = scmp.ne.s32.totalorder %s3577_s27, 7 }
  0x4d   : > { %v3254_v2 = vld [vmem:[%s3817_s19] sm:$0xff]   ;;  %3123 = vmatprep.subr.bf16.mxu1 %v3253_v1  ;;  %2835 = vmatprep.subr.bf16.mxu0 %v3253_v1  ;;  %v3256_v4 = vld [vmem:[%s3817_s19 + $0x8] sm:$0xff]   ;;  %v3258_v6 = vld [vmem:[%s3817_s19 + $0x10] sm:$0xff]   ;;  %s4517_s18 = sld [smem:[#allocation32_spill]] (!%p2817_p8) }
  0x4e   : > { %3131 = vmatpush3.bf16.msra.mxu1 %v3254_v2  ;;  %2836 = vmatpush3.bf16.msra.mxu0 %v3254_v2  ;;  %v3259_v7 = vld [vmem:[%s3817_s19 + $0x58] sm:$0xff]   ;;  %v3261_v9 = vld [vmem:[%s3817_s19 + $0x60] sm:$0xff]   ;;  %v3263_v11 = vld [vmem:[%s3817_s19 + $0x68] sm:$0xff]  }
  0x4f   : > { %3124 = vmatprep.subr.bf16.mxu1 %v3255_v3  ;;  %2837 = vmatprep.subr.bf16.mxu0 %v3255_v3  ;;  %v3260_v8 = vld [vmem:[%s3817_s19 + $0x18] sm:$0xff]   ;;  %v3262_v10 = vld [vmem:[%s3817_s19 + $0x20] sm:$0xff]   ;;  %v3264_v13 = vld [vmem:[%s3817_s19 + $0x28] sm:$0xff]  }
  0x50   : > { %v3271_v12 = vld [vmem:[%s3801_s16 + $0x44] ss:$8 sps:$4 sm:$0xff]   ;;  %v3265_v14 = vld [vmem:[%s3817_s19 + $0x70] sm:$0xff]   ;;  %v3267_v16 = vld [vmem:[%s3817_s19 + $0x78] sm:$0xff]  }
  0x51   : > { %931 = vmatprep.mubr.bf16.mxu1 %v3271_v12  ;;  %v3266_v15 = vld [vmem:[%s3817_s19 + $0x30] sm:$0xff]   ;;  %v3268_v17 = vld [vmem:[%s3817_s19 + $0x38] sm:$0xff]   ;;  %v3272_v18 = vld [vmem:[%s3826_s26 + $0x40] sm:$0xff]  }
  0x52   : > { %3132 = vmatpush3.bf16.msra.mxu1 %v3256_v4  ;;  %2838 = vmatpush3.bf16.msra.mxu0 %v3256_v4  ;;  %v3269_v19 = vld [vmem:[%s3801_s16 + $0x40] ss:$8 sps:$4 sm:$0xff]   ;;  %v3276_v21 = vld [vmem:[%s3801_s16 + $0x54] ss:$8 sps:$4 sm:$0xff]   ;;  %v3278_v25 = vld [vmem:[%s3801_s16 + $0x50] ss:$8 sps:$4 sm:$0xff]  }
  0x53   : > { %3125 = vmatprep.subr.bf16.mxu1 %v3257_v5  ;;  %2839 = vmatprep.subr.bf16.mxu0 %v3257_v5  ;;  %v3273_v20 = vld [vmem:[%s3826_s26] sm:$0xff]   ;;  %v3274_v22 = vld [vmem:[%s3826_s26 + $0x48] sm:$0xff]   ;;  %v3279_v24 = vld [vmem:[%s3826_s26 + $0x50] sm:$0xff]  }
  0x54   : > { %v3275_v23 = vld [vmem:[%s3826_s26 + $0x8] sm:$0xff]   ;;  %v3280_v26 = vld [vmem:[%s3826_s26 + $0x10] sm:$0xff]   ;;  %v3281_v28 = vld [vmem:[%s3826_s26 + $0x58] sm:$0xff]  }
  0x55   : > { %v3283_v27 = vld [vmem:[%s3801_s16 + $0x64] ss:$8 sps:$4 sm:$0xff]   ;;  %v3282_v29 = vld [vmem:[%s3826_s26 + $0x18] sm:$0xff]   ;;  %v3285_v30 = vld [vmem:[%s3801_s16 + $0x60] ss:$8 sps:$4 sm:$0xff]  }
  0x56   : > { %3133 = vmatpush3.bf16.msra.mxu1 %v3258_v6  ;;  %2840 = vmatpush3.bf16.msra.mxu0 %v3258_v6  ;;  %v3286_v31 = vld [vmem:[%s3826_s26 + $0x60] sm:$0xff]   ;;  %v3288_v35 = vld [vmem:[%s3826_s26 + $0x68] sm:$0xff]   ;;  %v3290_v36 = vld [vmem:[%s3801_s16 + $0x74] ss:$8 sps:$4 sm:$0xff]  }
  0x57   : > { %3126 = vmatprep.subr.bf16.mxu1 %v3259_v7  ;;  %2841 = vmatprep.subr.bf16.mxu0 %v3259_v7  ;;  %v3287_v32 = vld [vmem:[%s3826_s26 + $0x20] sm:$0xff]   ;;  %v3321_v37 = vld [vmem:[%s3801_s16 + $0x14] ss:$8 sps:$4 sm:$0xff]   ;;  %v3289_v38 = vld [vmem:[%s3826_s26 + $0x28] sm:$0xff]  }
  0x58   : > { %v3315_v33 = vld [vmem:[%s3801_s16] ss:$8 sps:$4 sm:$0xff]   ;;  %v3317_v34 = vld [vmem:[%s3801_s16 + $0x4] ss:$8 sps:$4 sm:$0xff]   ;;  %v3293_v39 = vld [vmem:[%s3826_s26 + $0x70] sm:$0xff]  }
  0x59   : > { %899 = vmatprep.mubr.bf16.mxu0 %v3317_v34  ;;  %v3292_v40 = vld [vmem:[%s3801_s16 + $0x70] ss:$8 sps:$4 sm:$0xff]   ;;  %v3299_v43 = vld [vmem:[%s3806_s11 + $0x4] ss:$8 sps:$4 sm:$0xff]   ;;  %v3329_v47 = vld [vmem:[%s3801_s16 + $0x20] ss:$8 sps:$4 sm:$0xff]  }
  0x5a   : > { %3134 = vmatpush3.bf16.msra.mxu1 %v3260_v8  ;;  %2842 = vmatpush3.bf16.msra.mxu0 %v3260_v8  ;;  %v3325_v41 = vld [vmem:[%s3801_s16 + $0x10] ss:$8 sps:$4 sm:$0xff]   ;;  %v3327_v44 = vld [vmem:[%s3801_s16 + $0x24] ss:$8 sps:$4 sm:$0xff]   ;;  %v3297_v48 = vld [vmem:[%s3806_s11] ss:$8 sps:$4 sm:$0xff]  }
  0x5b   : > { %3127 = vmatprep.subr.bf16.mxu1 %v3261_v9  ;;  %2843 = vmatprep.subr.bf16.mxu0 %v3261_v9  ;;  %v3294_v42 = vld [vmem:[%s3826_s26 + $0x30] sm:$0xff]   ;;  %v3295_v45 = vld [vmem:[%s3826_s26 + $0x78] sm:$0xff]   ;;  %v3303_v53 = vld [vmem:[%s3806_s11 + $0x24] ss:$8 sps:$4 sm:$0xff]  }
  0x5c   : > { %v3296_v46 = vld [vmem:[%s3826_s26 + $0x38] sm:$0xff]   ;;  %v3305_v54 = vld [vmem:[%s3806_s11 + $0x20] ss:$8 sps:$4 sm:$0xff]   ;;  %v3309_v57 = vld [vmem:[%s3806_s11 + $0x44] ss:$8 sps:$4 sm:$0xff]  }
  0x5d   : > { %v3330_v49 = vld [vmem:[%s3801_s16 + $0x34] ss:$8 sps:$4 sm:$0xff]   ;;  %v3332_v51 = vld [vmem:[%s3801_s16 + $0x30] ss:$8 sps:$4 sm:$0xff]   ;;  %v3311_v58 = vld [vmem:[%s3806_s11 + $0x40] ss:$8 sps:$4 sm:$0xff]  }
  0x5e   : > { %3135 = vmatpush3.bf16.msra.mxu1 %v3262_v10  ;;  %2844 = vmatpush3.bf16.msra.mxu0 %v3262_v10  ;;  %v3300_v50 = vld [vmem:[%s3806_s11 + $0x14] ss:$8 sps:$4 sm:$0xff]   ;;  %v3302_v52 = vld [vmem:[%s3806_s11 + $0x10] ss:$8 sps:$4 sm:$0xff]   ;;  %v3318_v61 = vld [vmem:[%s3806_s11 + $0x64] ss:$8 sps:$4 sm:$0xff]  }
  0x5f   : > { %3128 = vmatprep.subr.bf16.mxu1 %v3263_v11  ;;  %2845 = vmatprep.subr.bf16.mxu0 %v3263_v11  ;;  %v3306_v55 = vld [vmem:[%s3806_s11 + $0x34] ss:$8 sps:$4 sm:$0xff]   ;;  %v3308_v56 = vld [vmem:[%s3806_s11 + $0x30] ss:$8 sps:$4 sm:$0xff]   ;;  %v3320_v62 = vld [vmem:[%s3806_s11 + $0x60] ss:$8 sps:$4 sm:$0xff]  }
  0x60   : > { %v3312_v59 = vld [vmem:[%s3806_s11 + $0x54] ss:$8 sps:$4 sm:$0xff]   ;;  %v3314_v60 = vld [vmem:[%s3806_s11 + $0x50] ss:$8 sps:$4 sm:$0xff]   ;;  %v3921_v2 = vld [vmem:[%s4516_s25] ss:$0 sm:$0xff] }
  0x61   : > { %v3323_v63 = vld [vmem:[%s3806_s11 + $0x74] ss:$8 sps:$4 sm:$0xff]   ;;  %v3326_v0 = vld [vmem:[%s3806_s11 + $0x70] ss:$8 sps:$4 sm:$0xff]  }
  0x62   : > { %3136 = vmatpush3.bf16.msra.mxu1 %v3264_v13  ;;  %2846 = vmatpush3.bf16.msra.mxu0 %v3264_v13 }
  0x63   : > { %3129 = vmatprep.subr.bf16.mxu1 %v3265_v14  ;;  %2847 = vmatprep.subr.bf16.mxu0 %v3265_v14 }
  0x66   : > { %3137 = vmatpush3.bf16.msra.mxu1 %v3266_v15  ;;  %2848 = vmatpush3.bf16.msra.mxu0 %v3266_v15 }
  0x67   : > { %3130 = vmatprep.subr.bf16.mxu1 %v3267_v16  ;;  %2849 = vmatprep.subr.bf16.mxu0 %v3267_v16 }
  0x6a   : > { %3138 = vmatpush3.bf16.msra.mxu1 %v3268_v17  ;;  %2850 = vmatpush3.bf16.msra.mxu0 %v3268_v17 }
  0x6b   : > { %2899 = vmatprep.subr.bf16.mxu1 %v3272_v18 }
  0x6d   : > { %932 = vmatmul.mubr.bf16.vlgmr.msra.gmra.mrb[0].mxu1 %v3269_v19  ;;  %900 = vmatmul.mubr.bf16.vlgmr.msra.gmra.mrb[0].mxu0 %v3315_v33 }
  0x6e   : > { %2900 = vmatpush3.bf16.msra.mxu1 %v3273_v20  ;;  %939 = vmatprep.mubr.bf16.mxu1 %v3276_v21 }
  0x6f   : > { %2901 = vmatprep.subr.bf16.mxu1 %v3274_v22  ;;  %907 = vmatprep.mubr.bf16.mxu0 %v3321_v37 }
  0x72   : > { %2902 = vmatpush3.bf16.msra.mxu1 %v3275_v23 }
  0x73   : > { %2903 = vmatprep.subr.bf16.mxu1 %v3279_v24 }
  0x75   : > { %940 = vmatmul.mubr.bf16.gmra.mrb[4].mxu1 %v3278_v25  ;;  %908 = vmatmul.mubr.bf16.gmra.mrb[4].mxu0 %v3325_v41 }
  0x76   : > { %2904 = vmatpush3.bf16.msra.mxu1 %v3280_v26  ;;  %947 = vmatprep.mubr.bf16.mxu1 %v3283_v27 }
  0x77   : > { %2905 = vmatprep.subr.bf16.mxu1 %v3281_v28  ;;  %915 = vmatprep.mubr.bf16.mxu0 %v3327_v44 }
  0x7a   : > { %2906 = vmatpush3.bf16.msra.mxu1 %v3282_v29 }
  0x7b   : > { %2907 = vmatprep.subr.bf16.mxu1 %v3286_v31 }
  0x7d   : > { %948 = vmatmul.mubr.bf16.gmra.mrb[8].mxu1 %v3285_v30  ;;  %916 = vmatmul.mubr.bf16.gmra.mrb[8].mxu0 %v3329_v47 }
  0x7e   : > { %2908 = vmatpush3.bf16.msra.mxu1 %v3287_v32  ;;  %955 = vmatprep.mubr.bf16.mxu1 %v3290_v36 }
  0x7f   : > { %2909 = vmatprep.subr.bf16.mxu1 %v3288_v35  ;;  %923 = vmatprep.mubr.bf16.mxu0 %v3330_v49 }
  0x82   : > { %2910 = vmatpush3.bf16.msra.mxu1 %v3289_v38 }
  0x83   : > { %2911 = vmatprep.subr.bf16.mxu1 %v3293_v39 }
  0x85   : > { %956 = vmatmul.mubr.bf16.gmra.mrb[12].mxu1 %v3292_v40  ;;  %924 = vmatmul.mubr.bf16.gmra.mrb[12].mxu0 %v3332_v51 }
  0x86   : > { %2912 = vmatpush3.bf16.msra.mxu1 %v3294_v42  ;;  %1227 = vmatprep.mubr.bf16.mxu1 %v3299_v43 }
  0x87   : > { %2913 = vmatprep.subr.bf16.mxu1 %v3295_v45 }
  0x8a   : > { %2914 = vmatpush3.bf16.msra.mxu1 %v3296_v46 }
  0x8d   : > { %1228 = vmatmul.mubr.bf16.vlgmr.msra.gmra.mrb[16].mxu1 %v3297_v48 }
  0x8e   : > { %1235 = vmatprep.mubr.bf16.mxu1 %v3300_v50 }
  0x95   : > { %1236 = vmatmul.mubr.bf16.gmra.mrb[20].mxu1 %v3302_v52 }
  0x96   : > { %1243 = vmatprep.mubr.bf16.mxu1 %v3303_v53 }
  0x9d   : > { %1244 = vmatmul.mubr.bf16.gmra.mrb[24].mxu1 %v3305_v54 }
  0x9e   : > { %1251 = vmatprep.mubr.bf16.mxu1 %v3306_v55 }
  0xa5   : > { %1252 = vmatmul.mubr.bf16.gmra.mrb[28].mxu1 %v3308_v56 }
  0xa6   : > { %1259 = vmatprep.mubr.bf16.mxu1 %v3309_v57 }
  0xad   : > { %1260 = vmatmul.mubr.bf16.gmra.mrb[32].mxu1 %v3311_v58 }
  0xae   : > { %1267 = vmatprep.mubr.bf16.mxu1 %v3312_v59 }
  0xb5   : > { %1268 = vmatmul.mubr.bf16.gmra.mrb[36].mxu1 %v3314_v60 }
  0xb6   : > { %1275 = vmatprep.mubr.bf16.mxu1 %v3318_v61 }
  0xbd   : > { %1276 = vmatmul.mubr.bf16.gmra.mrb[40].mxu1 %v3320_v62 }
  0xbe   : > { %1283 = vmatprep.mubr.bf16.mxu1 %v3323_v63 }
  0xc5   : > { %1284 = vmatmul.mubr.bf16.gmra.mrb[44].mxu1 %v3326_v0 }
 0x140   : > { %v2875_v1 = vpop.f32.mrb[0].mxu1  ;;  %v2851_v19 = vpop.f32.mrb[0].mxu0 }
 0x141   : > { %v2876_v3 = vpop.f32.mrb[1].mxu1  ;;  %v2852_v22 = vpop.f32.mrb[1].mxu0 }
 0x142   : > { %v2877_v4 = vadd.f32 %v2876_v3, %v2875_v1  ;;  %v2878_v5 = vpop.f32.mrb[2].mxu1  ;;  %v2853_v24 = vadd.f32 %v2852_v22, %v2851_v19  ;;  %v2854_v25 = vpop.f32.mrb[2].mxu0  ;;  %v3971_v1 = vld [vmem:[%s585_s23] ss:$0 sm:$0xff] }
 0x143   : > { %v2879_v6 = vpop.f32.mrb[3].mxu1  ;;  %v2855_v28 = vpop.f32.mrb[3].mxu0 }
 0x144   : > { %v3924_v7 = vadd.f32 %v2877_v4, %v3921_v2  ;;  %v2880_v8 = vadd.f32 %v2879_v6, %v2878_v5  ;;  %v902_v30 = vadd.f32 %v2853_v24, %v3921_v2  ;;  %v2856_v31 = vadd.f32 %v2855_v28, %v2854_v25 }
 0x146   : > { %v3927_v9 = vadd.f32 %v2880_v8, %v3921_v2  ;;  %v905_v34 = vadd.f32 %v2856_v31, %v3921_v2 }
 0x148   : > { %v1624_v10 = vpack.c.bf16 %v3927_v9, %v3924_v7  ;;  %v2881_v11 = vpop.f32.mrb[4].mxu1  ;;  %v1620_v36 = vpack.c.bf16 %v905_v34, %v902_v30  ;;  %v2857_v37 = vpop.f32.mrb[4].mxu0  ;;  %v3333_v7 = vld [vmem:[%s3835_s2 + $0x40] sm:$0xff]  }
 0x149   : > { %v2882_v12 = vpop.f32.mrb[5].mxu1  ;;  %v2858_v40 = vpop.f32.mrb[5].mxu0  ;;  %v3334_v9 = vld [vmem:[%s3835_s2] sm:$0xff]   ;;  %2963 = vmatprep.subr.bf16.mxu0 %v3333_v7 }
 0x14a   : > { %v2883_v13 = vadd.f32 %v2882_v12, %v2881_v11  ;;  %v2884_v14 = vpop.f32.mrb[6].mxu1  ;;  %v2859_v42 = vadd.f32 %v2858_v40, %v2857_v37  ;;  %v2860_v43 = vpop.f32.mrb[6].mxu0  ;;  %3075 = vmatprep.mubr.msk.bf16.mxu1 %vm1636_vm0, %v1620_v36  ;;  %2964 = vmatpush3.bf16.msra.mxu0 %v3334_v9 }
 0x14b   : > { %v2885_v15 = vpop.f32.mrb[7].mxu1  ;;  %v2861_v46 = vpop.f32.mrb[7].mxu0 }
 0x14c   : > { %v3932_v16 = vadd.f32 %v2883_v13, %v3921_v2  ;;  %v2886_v17 = vadd.f32 %v2885_v15, %v2884_v14  ;;  %v3951_v48 = vadd.f32 %v2859_v42, %v3921_v2  ;;  %v2862_v49 = vadd.f32 %v2861_v46, %v2860_v43 }
 0x14e   : > { %v3935_v18 = vadd.f32 %v2886_v17, %v3921_v2  ;;  %v3957_v52 = vadd.f32 %v2862_v49, %v3921_v2 }
 0x150   : > { %v1625_v20 = vpack.c.bf16 %v3935_v18, %v3932_v16  ;;  %v2887_v21 = vpop.f32.mrb[8].mxu1  ;;  %v1621_v54 = vpack.c.bf16 %v3957_v52, %v3951_v48  ;;  %v2863_v55 = vpop.f32.mrb[8].mxu0  ;;  %v3336_v16 = vld [vmem:[%s3835_s2 + $0x8] sm:$0xff]   ;;  %v3337_v18 = vld [vmem:[%s3835_s2 + $0x50] sm:$0xff]   ;;  %v3342_v48 = vld [vmem:[%s3835_s2 + $0x20] sm:$0xff]  }
 0x151   : > { %v2888_v23 = vpop.f32.mrb[9].mxu1  ;;  %v2864_v58 = vpop.f32.mrb[9].mxu0  ;;  %v3344_v52 = vld [vmem:[%s3835_s2 + $0x28] sm:$0xff]  }
 0x152   : > { %v2889_v26 = vadd.f32 %v2888_v23, %v2887_v21  ;;  %v2890_v27 = vpop.f32.mrb[10].mxu1  ;;  %v2865_v60 = vadd.f32 %v2864_v58, %v2863_v55  ;;  %v2866_v61 = vpop.f32.mrb[10].mxu0 }
 0x153   : > { %v2891_v29 = vpop.f32.mrb[11].mxu1  ;;  %v2867_v0 = vpop.f32.mrb[11].mxu0 }
 0x154   : > { %v3941_v32 = vadd.f32 %v2889_v26, %v3921_v2  ;;  %v2892_v33 = vadd.f32 %v2891_v29, %v2890_v27  ;;  %v3974_v4 = vadd.f32 %v2865_v60, %v3921_v2  ;;  %v2868_v5 = vadd.f32 %v2867_v0, %v2866_v61 }
 0x156   : > { %v3945_v35 = vadd.f32 %v2892_v33, %v3921_v2  ;;  %v3977_v8 = vadd.f32 %v2868_v5, %v3921_v2 }
 0x158   : > { %v1626_v38 = vpack.c.bf16 %v3945_v35, %v3941_v32  ;;  %v2893_v39 = vpop.f32.mrb[12].mxu1  ;;  %v1622_v13 = vpack.c.bf16 %v3977_v8, %v3974_v4  ;;  %v2869_v14 = vpop.f32.mrb[12].mxu0  ;;  %v3339_v32 = vld [vmem:[%s3835_s2 + $0x58] sm:$0xff]   ;;  %v3351_v4 = vld [vmem:[%s3811_s9 + $0x4] ss:$8 sps:$4 sm:$0xff]  }
 0x159   : > { %v2894_v41 = vpop.f32.mrb[13].mxu1  ;;  %v2870_v19 = vpop.f32.mrb[13].mxu0  ;;  %v3340_v35 = vld [vmem:[%s3835_s2 + $0x18] sm:$0xff]   ;;  %v3349_v8 = vld [vmem:[%s3811_s9] ss:$8 sps:$4 sm:$0xff]   ;;  %1555 = vmatprep.mubr.bf16.mxu0 %v3351_v4 }
 0x15a   : > { %v2895_v44 = vadd.f32 %v2894_v41, %v2893_v39  ;;  %v2896_v45 = vpop.f32.mrb[14].mxu1  ;;  %v2871_v22 = vadd.f32 %v2870_v19, %v2869_v14  ;;  %v2872_v23 = vpop.f32.mrb[14].mxu0 }
 0x15b   : > { %v2897_v47 = vpop.f32.mrb[15].mxu1  ;;  %v2873_v27 = vpop.f32.mrb[15].mxu0 }
 0x15c   : > { %v3954_v50 = vadd.f32 %v2895_v44, %v3921_v2  ;;  %v2898_v51 = vadd.f32 %v2897_v47, %v2896_v45  ;;  %v3986_v29 = vadd.f32 %v2871_v22, %v3921_v2  ;;  %v2874_v30 = vadd.f32 %v2873_v27, %v2872_v23 }
 0x15e   : > { %v3960_v53 = vadd.f32 %v2898_v51, %v3921_v2  ;;  %v3989_v33 = vadd.f32 %v2874_v30, %v3921_v2 }
 0x160   : > { %v1627_v56 = vpack.c.bf16 %v3960_v53, %v3954_v50  ;;  %v2915_v57 = vpop.f32.mrb[16].mxu1  ;;  %v1623_v37 = vpack.c.bf16 %v3989_v33, %v3986_v29  ;;  %v3343_v50 = vld [vmem:[%s3835_s2 + $0x68] sm:$0xff]   ;;  %v3345_v53 = vld [vmem:[%s3835_s2 + $0x70] sm:$0xff]  }
 0x161   : > { %v2916_v59 = vpop.f32.mrb[17].mxu1  ;;  %v3354_v29 = vld [vmem:[%s3811_s9 + $0x10] ss:$8 sps:$4 sm:$0xff]   ;;  %v3355_v33 = vld [vmem:[%s3811_s9 + $0x24] ss:$8 sps:$4 sm:$0xff]  }
 0x162   : > { %v2917_v62 = vadd.f32 %v2916_v59, %v2915_v57  ;;  %v2918_v63 = vpop.f32.mrb[18].mxu1 }
 0x163   : > { %v2919_v3 = vpop.f32.mrb[19].mxu1 }
 0x164   : > { %v2920_v6 = vadd.f32 %v2919_v3, %v2918_v63  ;;  %v1230_v11 = vadd.f32 %v2917_v62, %v3971_v1 }
 0x166   : > { %v1233_v12 = vadd.f32 %v2920_v6, %v3971_v1 }
 0x168   : > { %v1628_v15 = vpack.c.bf16 %v1233_v12, %v1230_v11  ;;  %v2921_v17 = vpop.f32.mrb[20].mxu1 }
 0x169   : > { %v2922_v21 = vpop.f32.mrb[21].mxu1 }
 0x16a   : > { %v2923_v24 = vadd.f32 %v2922_v21, %v2921_v17  ;;  %v2924_v25 = vpop.f32.mrb[22].mxu1  ;;  %3139 = vmatprep.subr.msk.bf16.mxu1 %vm1636_vm0, %v1628_v15  ;;  %v1662_v26 = vsel %vm1636_vm0, %v1628_v15, 0 }
 0x16b   : > { %v2925_v28 = vpop.f32.mrb[23].mxu1  ;;  %3060 = vmatpush3.bf16.xpose.msra.mxu1 %v1662_v26 }
 0x16c   : > { %v2926_v31 = vadd.f32 %v2925_v28, %v2924_v25  ;;  %v1238_v34 = vadd.f32 %v2923_v24, %v3971_v1 }
 0x16e   : > { %v1241_v36 = vadd.f32 %v2926_v31, %v3971_v1 }
 0x170   : > { %v1629_v39 = vpack.c.bf16 %v1241_v36, %v1238_v34  ;;  %v2927_v40 = vpop.f32.mrb[24].mxu1 }
 0x171   : > { %v2928_v41 = vpop.f32.mrb[25].mxu1 }
 0x172   : > { %v2929_v42 = vadd.f32 %v2928_v41, %v2927_v40  ;;  %v2930_v43 = vpop.f32.mrb[26].mxu1  ;;  %3140 = vmatprep.subr.msk.bf16.mxu1 %vm1636_vm0, %v1629_v39  ;;  %v1665_v44 = vsel %vm1636_vm0, %v1629_v39, 0 }
 0x173   : > { %v2931_v45 = vpop.f32.mrb[27].mxu1  ;;  %3062 = vmatpush3.bf16.xpose.msra.mxu1 %v1665_v44 }
 0x174   : > { %v2932_v2 = vadd.f32 %v2931_v45, %v2930_v43  ;;  %v1246_v46 = vadd.f32 %v2929_v42, %v3971_v1 }
 0x176   : > { %v1249_v47 = vadd.f32 %v2932_v2, %v3971_v1 }
 0x178   : > { %v1630_v49 = vpack.c.bf16 %v1249_v47, %v1246_v46  ;;  %v2933_v51 = vpop.f32.mrb[28].mxu1 }
 0x179   : > { %v2934_v55 = vpop.f32.mrb[29].mxu1 }
 0x17a   : > { %v2935_v57 = vadd.f32 %v2934_v55, %v2933_v51  ;;  %v2936_v58 = vpop.f32.mrb[30].mxu1  ;;  %3141 = vmatprep.subr.msk.bf16.mxu1 %vm1636_vm0, %v1630_v49  ;;  %v1668_v59 = vsel %vm1636_vm0, %v1630_v49, 0 }
 0x17b   : > { %v2937_v60 = vpop.f32.mrb[31].mxu1  ;;  %3064 = vmatpush3.bf16.xpose.msra.mxu1 %v1668_v59 }
 0x17c   : > { %v2938_v61 = vadd.f32 %v2937_v60, %v2936_v58  ;;  %v1254_v62 = vadd.f32 %v2935_v57, %v3971_v1 }
 0x17e   : > { %v1257_v63 = vadd.f32 %v2938_v61, %v3971_v1 }
 0x180   : > { %v1631_v0 = vpack.c.bf16 %v1257_v63, %v1254_v62  ;;  %v2939_v3 = vpop.f32.mrb[32].mxu1 }
 0x181   : > { %v2940_v5 = vpop.f32.mrb[33].mxu1 }
 0x182   : > { %v2941_v6 = vadd.f32 %v2940_v5, %v2939_v3  ;;  %v2942_v11 = vpop.f32.mrb[34].mxu1  ;;  %3142 = vmatprep.subr.msk.bf16.mxu1 %vm1636_vm0, %v1631_v0  ;;  %v1671_v12 = vsel %vm1636_vm0, %v1631_v0, 0  ;;  %v3358_v0 = vld [vmem:[%s3811_s9 + $0x34] ss:$8 sps:$4 sm:$0xff]   ;;  %v3360_v3 = vld [vmem:[%s3811_s9 + $0x30] ss:$8 sps:$4 sm:$0xff]  }
 0x183   : > { %v2943_v14 = vpop.f32.mrb[35].mxu1  ;;  %3066 = vmatpush3.bf16.xpose.msra.mxu1 %v1671_v12  ;;  %v3361_v5 = vld [vmem:[%s3811_s9 + $0x44] ss:$8 sps:$4 sm:$0xff]   ;;  %v3366_v12 = vld [vmem:[%s3811_s9 + $0x50] ss:$8 sps:$4 sm:$0xff]  }
 0x184   : > { %v2944_v15 = vadd.f32 %v2943_v14, %v2942_v11  ;;  %v1262_v17 = vadd.f32 %v2941_v6, %v3971_v1  ;;  %v3363_v6 = vld [vmem:[%s3811_s9 + $0x40] ss:$8 sps:$4 sm:$0xff]   ;;  %v3364_v11 = vld [vmem:[%s3811_s9 + $0x54] ss:$8 sps:$4 sm:$0xff]   ;;  %v3367_v14 = vld [vmem:[%s3811_s9 + $0x64] ss:$8 sps:$4 sm:$0xff]  }
 0x186   : > { %v1265_v19 = vadd.f32 %v2944_v15, %v3971_v1  ;;  %v3369_v15 = vld [vmem:[%s3811_s9 + $0x60] ss:$8 sps:$4 sm:$0xff]  }
 0x188   : > { %v1632_v21 = vpack.c.bf16 %v1265_v19, %v1262_v17  ;;  %v2945_v22 = vpop.f32.mrb[36].mxu1  ;;  %v3370_v17 = vld [vmem:[%s3811_s9 + $0x74] ss:$8 sps:$4 sm:$0xff]   ;;  %v3372_v19 = vld [vmem:[%s3811_s9 + $0x70] ss:$8 sps:$4 sm:$0xff]  }
 0x189   : > { %v2946_v23 = vpop.f32.mrb[37].mxu1 }
 0x18a   : > { %v2947_v24 = vadd.f32 %v2946_v23, %v2945_v22  ;;  %v2948_v25 = vpop.f32.mrb[38].mxu1  ;;  %3143 = vmatprep.subr.msk.bf16.mxu1 %vm1636_vm0, %v1632_v21  ;;  %v1674_v26 = vsel %vm1636_vm0, %v1632_v21, 0 }
 0x18b   : > { %v2949_v27 = vpop.f32.mrb[39].mxu1  ;;  %3068 = vmatpush3.bf16.xpose.msra.mxu1 %v1674_v26 }
 0x18c   : > { %v2950_v28 = vadd.f32 %v2949_v27, %v2948_v25  ;;  %v1270_v30 = vadd.f32 %v2947_v24, %v3971_v1 }
 0x18e   : > { %v1273_v31 = vadd.f32 %v2950_v28, %v3971_v1 }
 0x190   : > { %v1633_v34 = vpack.c.bf16 %v1273_v31, %v1270_v30  ;;  %v2951_v36 = vpop.f32.mrb[40].mxu1 }
 0x191   : > { %v2952_v39 = vpop.f32.mrb[41].mxu1 }
 0x192   : > { %v2953_v40 = vadd.f32 %v2952_v39, %v2951_v36  ;;  %v2954_v41 = vpop.f32.mrb[42].mxu1  ;;  %3144 = vmatprep.subr.msk.bf16.mxu1 %vm1636_vm0, %v1633_v34  ;;  %v1677_v42 = vsel %vm1636_vm0, %v1633_v34, 0 }
 0x193   : > { %v2955_v43 = vpop.f32.mrb[43].mxu1  ;;  %3070 = vmatpush3.bf16.xpose.msra.mxu1 %v1677_v42 }
 0x194   : > { %v2956_v44 = vadd.f32 %v2955_v43, %v2954_v41  ;;  %v1278_v45 = vadd.f32 %v2953_v40, %v3971_v1 }
 0x196   : > { %v1281_v2 = vadd.f32 %v2956_v44, %v3971_v1  ;;  %v4134_v44 = vld [vmem:[%s593_s3] ss:$0 sm:$0xff] }
 0x198   : > { %v1634_v46 = vpack.c.bf16 %v1281_v2, %v1278_v45  ;;  %v2957_v47 = vpop.f32.mrb[44].mxu1 }
 0x199   : > { %v2958_v49 = vpop.f32.mrb[45].mxu1 }
 0x19a   : > { %v2959_v51 = vadd.f32 %v2958_v49, %v2957_v47  ;;  %v2960_v55 = vpop.f32.mrb[46].mxu1  ;;  %3145 = vmatprep.subr.msk.bf16.mxu1 %vm1636_vm0, %v1634_v46  ;;  %v1680_v57 = vsel %vm1636_vm0, %v1634_v46, 0 }
 0x19b   : > { %v2961_v58 = vpop.f32.mrb[47].mxu1  ;;  %3072 = vmatpush3.bf16.xpose.msra.mxu1 %v1680_v57 }
 0x19c   : > { %v2962_v59 = vadd.f32 %v2961_v58, %v2960_v55  ;;  %v1286_v60 = vadd.f32 %v2959_v51, %v3971_v1 }
 0x19e   : > { %v1289_v61 = vadd.f32 %v2962_v59, %v3971_v1  ;;  %v3348_v1 = vld [vmem:[%s3835_s2 + $0x38] sm:$0xff]  }
 0x1a0   : > { %v1635_v62 = vpack.c.bf16 %v1289_v61, %v1286_v60 }
 0x1a2   : > { %3146 = vmatprep.subr.msk.bf16.mxu1 %vm1636_vm0, %v1635_v62  ;;  %v1683_v63 = vsel %vm1636_vm0, %v1635_v62, 0 }
 0x1a3   : > { %3074 = vmatpush3.bf16.xpose.msra.mxu1 %v1683_v63 }
 0x1aa   : > { %3076 = vmatmul.mubr.msk.bf16.vlgmr.msra.gmra.mrb[48].mxu1 %vm1636_vm0, %v1621_v54  ;;  %v3346_v54 = vld [vmem:[%s3835_s2 + $0x30] sm:$0xff]  }
 0x1ab   : > { %3079 = vmatprep.mubr.msk.bf16.mxu1 %vm1636_vm0, %v1622_v13  ;;  %v3352_v13 = vld [vmem:[%s3811_s9 + $0x14] ss:$8 sps:$4 sm:$0xff]  }
 0x1b2   : > { %3080 = vmatmul.mubr.msk.bf16.gmra.mrb[52].mxu1 %vm1636_vm0, %v1623_v37  ;;  %v3357_v37 = vld [vmem:[%s3811_s9 + $0x20] ss:$8 sps:$4 sm:$0xff]  }
 0x1b3   : > { %3083 = vmatprep.mubr.msk.bf16.mxu1 %vm1636_vm0, %v1624_v10  ;;  %v3335_v10 = vld [vmem:[%s3835_s2 + $0x48] sm:$0xff]  }
 0x1b4   : > { %2965 = vmatprep.subr.bf16.mxu0 %v3335_v10 }
 0x1b5   : > { %2966 = vmatpush3.bf16.msra.mxu0 %v3336_v16 }
 0x1b6   : > { %2967 = vmatprep.subr.bf16.mxu0 %v3337_v18 }
 0x1ba   : > { %3084 = vmatmul.mubr.msk.bf16.gmra.mrb[56].mxu1 %vm1636_vm0, %v1625_v20  ;;  %v3338_v20 = vld [vmem:[%s3835_s2 + $0x10] sm:$0xff]  }
 0x1bb   : > { %3087 = vmatprep.mubr.msk.bf16.mxu1 %vm1636_vm0, %v1626_v38  ;;  %2968 = vmatpush3.bf16.msra.mxu0 %v3338_v20  ;;  %v3341_v38 = vld [vmem:[%s3835_s2 + $0x60] sm:$0xff]  }
 0x1bc   : > { %2969 = vmatprep.subr.bf16.mxu0 %v3339_v32 }
 0x1bf   : > { %2970 = vmatpush3.bf16.msra.mxu0 %v3340_v35 }
 0x1c0   : > { %2971 = vmatprep.subr.bf16.mxu0 %v3341_v38 }
 0x1c2   : > { %3088 = vmatmul.mubr.msk.bf16.gmra.mrb[60].mxu1 %vm1636_vm0, %v1627_v56  ;;  %v3347_v56 = vld [vmem:[%s3835_s2 + $0x78] sm:$0xff]  }
 0x1c3   : > { %2972 = vmatpush3.bf16.msra.mxu0 %v3342_v48 }
 0x1c4   : > { %2973 = vmatprep.subr.bf16.mxu0 %v3343_v50 }
 0x1c7   : > { %2974 = vmatpush3.bf16.msra.mxu0 %v3344_v52 }
 0x1c8   : > { %2975 = vmatprep.subr.bf16.mxu0 %v3345_v53 }
 0x1cb   : > { %2976 = vmatpush3.bf16.msra.mxu0 %v3346_v54 }
 0x1cc   : > { %2977 = vmatprep.subr.bf16.mxu0 %v3347_v56 }
 0x1cf   : > { %2978 = vmatpush3.bf16.msra.mxu0 %v3348_v1 }
 0x1d2   : > { %1556 = vmatmul.mubr.bf16.vlgmr.msra.gmra.mrb[16].mxu0 %v3349_v8 }
 0x1d3   : > { %1563 = vmatprep.mubr.bf16.mxu0 %v3352_v13 }
 0x1da   : > { %1564 = vmatmul.mubr.bf16.gmra.mrb[20].mxu0 %v3354_v29 }
 0x1db   : > { %1571 = vmatprep.mubr.bf16.mxu0 %v3355_v33 }
 0x1e2   : > { %1572 = vmatmul.mubr.bf16.gmra.mrb[24].mxu0 %v3357_v37 }
 0x1e3   : > { %1579 = vmatprep.mubr.bf16.mxu0 %v3358_v0 }
 0x1ea   : > { %1580 = vmatmul.mubr.bf16.gmra.mrb[28].mxu0 %v3360_v3 }
 0x1eb   : > { %1587 = vmatprep.mubr.bf16.mxu0 %v3361_v5 }
 0x1f2   : > { %1588 = vmatmul.mubr.bf16.gmra.mrb[32].mxu0 %v3363_v6 }
 0x1f3   : > { %1595 = vmatprep.mubr.bf16.mxu0 %v3364_v11 }
 0x1fa   : > { %1596 = vmatmul.mubr.bf16.gmra.mrb[36].mxu0 %v3366_v12 }
 0x1fb   : > { %1603 = vmatprep.mubr.bf16.mxu0 %v3367_v14 }
 0x202   : > { %1604 = vmatmul.mubr.bf16.gmra.mrb[40].mxu0 %v3369_v15 }
 0x203   : > { %1611 = vmatprep.mubr.bf16.mxu0 %v3370_v17 }
 0x20a   : > { %1612 = vmatmul.mubr.bf16.gmra.mrb[44].mxu0 %v3372_v19 }
 0x27d   : > { %v4081_v21 = vpop.f32.mrb[48].mxu1 }
 0x27e   : > { %1786 = vmax.xlane.f32.xlu1 %v4081_v21  ;;  %v4084_v22 = vpop.f32.mrb[49].mxu1 }
 0x27f   : > { %1782 = vmax.xlane.f32.xlu0 %v4084_v22  ;;  %v4087_v23 = vpop.f32.mrb[50].mxu1 }
 0x280   : > { %v4089_v24 = vpop.f32.mrb[51].mxu1 }
 0x282   : > { %1788 = vmax.xlane.f32.xlu1 %v4087_v23 }
 0x283   : > { %1784 = vmax.xlane.f32.xlu0 %v4089_v24 }
 0x285   : > { %v4093_v25 = vpop.f32.mrb[52].mxu1 }
 0x286   : > { %v4095_v26 = vpop.f32.mrb[53].mxu1 }
 0x287   : > { %1790 = vmax.xlane.f32.xlu0 %v4095_v26  ;;  %v4098_v27 = vpop.f32.mrb[54].mxu1 }
 0x288   : > { %v4100_v28 = vpop.f32.mrb[55].mxu1 }
 0x289   : > { %1792 = vmax.xlane.f32.xlu1 %v4100_v28 }
 0x28b   : > { %1794 = vmax.xlane.f32.xlu0 %v4093_v25 }
 0x28d   : > { %1796 = vmax.xlane.f32.xlu1 %v4098_v27  ;;  %v4105_v30 = vpop.f32.mrb[56].mxu1 }
 0x28e   : > { %v4107_v31 = vpop.f32.mrb[57].mxu1 }
 0x28f   : > { %1798 = vmax.xlane.f32.xlu0 %v4107_v31  ;;  %v4110_v34 = vpop.f32.mrb[58].mxu1 }
 0x290   : > { %v4112_v36 = vpop.f32.mrb[59].mxu1 }
 0x291   : > { %1800 = vmax.xlane.f32.xlu1 %v4112_v36 }
 0x293   : > { %1802 = vmax.xlane.f32.xlu0 %v4105_v30 }
 0x295   : > { %1804 = vmax.xlane.f32.xlu1 %v4110_v34  ;;  %v4117_v39 = vpop.f32.mrb[60].mxu1 }
 0x296   : > { %v4119_v40 = vpop.f32.mrb[61].mxu1 }
 0x297   : > { %1806 = vmax.xlane.f32.xlu0 %v4119_v40  ;;  %v4122_v41 = vpop.f32.mrb[62].mxu1 }
 0x298   : > { %v4124_v42 = vpop.f32.mrb[63].mxu1 }
 0x299   : > { %1808 = vmax.xlane.f32.xlu1 %v4124_v42 }
 0x29b   : > { %1810 = vmax.xlane.f32.xlu0 %v4117_v39 }
 0x29d   : > { %1812 = vmax.xlane.f32.xlu1 %v4122_v41 }
 0x2a5   : > { %v2979_v43 = vpop.f32.mrb[16].mxu0 }
 0x2a6   : > { %v2980_v45 = vpop.f32.mrb[17].mxu0 }
 0x2a7   : > { %v2981_v2 = vadd.f32 %v2980_v45, %v2979_v43  ;;  %v2982_v46 = vpop.f32.mrb[18].mxu0 }
 0x2a8   : > { %v2983_v47 = vpop.f32.mrb[19].mxu0 }
 0x2a9   : > { %v1558_v49 = vadd.f32 %v2981_v2, %v4134_v44  ;;  %v2984_v51 = vadd.f32 %v2983_v47, %v2982_v46 }
 0x2ab   : > { %v1561_v55 = vadd.f32 %v2984_v51, %v4134_v44 }
 0x2ad   : > { %v2985_v57 = vpop.f32.mrb[20].mxu0  ;;  %v1950_v58 = vpack.c.bf16 %v1561_v55, %v1558_v49 }
 0x2ae   : > { %v2986_v59 = vpop.f32.mrb[21].mxu0 }
 0x2af   : > { %v2987_v60 = vadd.f32 %v2986_v59, %v2985_v57  ;;  %v2988_v61 = vpop.f32.mrb[22].mxu0  ;;  %3091 = vmatprep.subr.bf16.mxu1 %v1950_v58 }
 0x2b0   : > { %v2989_v62 = vpop.f32.mrb[23].mxu0  ;;  %3092 = vmatpush3.bf16.msra.mxu1 %v1950_v58 }
 0x2b1   : > { %v1566_v63 = vadd.f32 %v2987_v60, %v4134_v44  ;;  %v2990_v7 = vadd.f32 %v2989_v62, %v2988_v61 }
 0x2b3   : > { %v1569_v9 = vadd.f32 %v2990_v7, %v4134_v44 }
 0x2b5   : > { %v2991_v10 = vpop.f32.mrb[24].mxu0  ;;  %v1951_v16 = vpack.c.bf16 %v1569_v9, %v1566_v63 }
 0x2b6   : > { %v2992_v18 = vpop.f32.mrb[25].mxu0 }
 0x2b7   : > { %v2993_v20 = vadd.f32 %v2992_v18, %v2991_v10  ;;  %v2994_v32 = vpop.f32.mrb[26].mxu0  ;;  %3093 = vmatprep.subr.bf16.mxu1 %v1951_v16 }
 0x2b8   : > { %v2995_v35 = vpop.f32.mrb[27].mxu0  ;;  %3094 = vmatpush3.bf16.msra.mxu1 %v1951_v16 }
 0x2b9   : > { %v1574_v48 = vadd.f32 %v2993_v20, %v4134_v44  ;;  %v2996_v50 = vadd.f32 %v2995_v35, %v2994_v32 }
 0x2bb   : > { %v1577_v56 = vadd.f32 %v2996_v50, %v4134_v44 }
 0x2bd   : > { %v2997_v8 = vpop.f32.mrb[28].mxu0  ;;  %v1952_v13 = vpack.c.bf16 %v1577_v56, %v1574_v48 }
 0x2be   : > { %v2998_v0 = vpop.f32.mrb[29].mxu0 }
 0x2bf   : > { %v2999_v5 = vadd.f32 %v2998_v0, %v2997_v8  ;;  %v3000_v6 = vpop.f32.mrb[30].mxu0  ;;  %3095 = vmatprep.subr.bf16.mxu1 %v1952_v13 }
 0x2c0   : > { %v3001_v11 = vpop.f32.mrb[31].mxu0  ;;  %3096 = vmatpush3.bf16.msra.mxu1 %v1952_v13 }
 0x2c1   : > { %v1582_v14 = vadd.f32 %v2999_v5, %v4134_v44  ;;  %v3002_v15 = vadd.f32 %v3001_v11, %v3000_v6 }
 0x2c5   : > { %v3003_v45 = vpop.f32.mrb[32].mxu0 }
 0x2c6   : > { %v3004_v47 = vpop.f32.mrb[33].mxu0 }
 0x2c7   : > { %v3005_v55 = vadd.f32 %v3004_v47, %v3003_v45  ;;  %v3006_v57 = vpop.f32.mrb[34].mxu0 }
 0x2c9   : > { %v1590_v62 = vadd.f32 %v3005_v55, %v4134_v44 }
 0x30b   : > { %v1787_v38 = vpop.xlane.xlu1 %1786 }
 0x30c   : > { %v1816_v52 = vsub.f32 %v4081_v21, %v1787_v38  ;;  %v1783_v53 = vpop.xlane.xlu0 %1782 }
 0x30d   : > { %v1814_v54 = vsub.f32 %v4084_v22, %v1783_v53  ;;  %v1585_v22 = vadd.f32 %v3002_v15, %v4134_v44 }
 0x30e   : > { %v1834_v29 = vmul.f32 1.442695, %v1816_v52 }
 0x30f   : > { %v1830_v1 = vmul.f32 1.442695, %v1814_v54  ;;  %v1789_v4 = vpop.xlane.xlu1 %1788  ;;  %v1953_v2 = vpack.c.bf16 %v1585_v22, %v1582_v14 }
 0x310   : > { %v1817_v33 = vsub.f32 %v4087_v23, %v1789_v4  ;;  %v1785_v37 = vpop.xlane.xlu0 %1784 }
 0x311   : > { %3379 = vpow2.f32 %v1830_v1  ;;  %v1815_v3 = vsub.f32 %v4089_v24, %v1785_v37  ;;  %3097 = vmatprep.subr.bf16.mxu1 %v1953_v2 }
 0x312   : > { %3381 = vpow2.f32 %v1834_v29  ;;  %v1836_v17 = vmul.f32 1.442695, %v1817_v33  ;;  %3098 = vmatpush3.bf16.msra.mxu1 %v1953_v2 }
 0x313   : > { %v1832_v12 = vmul.f32 1.442695, %v1815_v3 }
 0x314   : > { %v1791_v19 = vpop.xlane.xlu0 %1790 }
 0x315   : > { %3383 = vpow2.f32 %v1832_v12  ;;  %v1818_v21 = vsub.f32 %v4095_v26, %v1791_v19  ;;  %v3007_v26 = vpop.f32.mrb[35].mxu0 }
 0x316   : > { %v1793_v23 = vpop.xlane.xlu1 %1792  ;;  %3385 = vpow2.f32 %v1836_v17  ;;  %v3008_v63 = vadd.f32 %v3007_v26, %v3006_v57  ;;  %v3009_v32 = vpop.f32.mrb[36].mxu0 }
 0x317   : > { %v1838_v43 = vmul.f32 1.442695, %v1818_v21  ;;  %v1819_v24 = vsub.f32 %v4100_v28, %v1793_v23  ;;  %v3010_v38 = vpop.f32.mrb[37].mxu0 }
 0x318   : > { %v1795_v46 = vpop.xlane.xlu0 %1794  ;;  %v1593_v16 = vadd.f32 %v3008_v63, %v4134_v44  ;;  %v3011_v52 = vadd.f32 %v3010_v38, %v3009_v32  ;;  %v3012_v53 = vpop.f32.mrb[38].mxu0  ;;  %v3373_v32 = vld [vmem:[%s3845_s0] ss:$8 sps:$4 sm:$0xff]   ;;  %v3378_v38 = vld [vmem:[%s3845_s0 + $0x14] ss:$8 sps:$4 sm:$0xff]  }
 0x319   : > { %3387 = vpow2.f32 %v1838_v43  ;;  %v1840_v49 = vmul.f32 1.442695, %v1819_v24  ;;  %v1820_v51 = vsub.f32 %v4093_v25, %v1795_v46 }
 0x31a   : > { %v1797_v58 = vpop.xlane.xlu1 %1796  ;;  %v1954_v48 = vpack.c.bf16 %v1593_v16, %v1590_v62 }
 0x31b   : > { %v4151_v59 = vpop.eup %3379  ;;  %v1842_v60 = vmul.f32 1.442695, %v1820_v51  ;;  %v1821_v28 = vsub.f32 %v4098_v27, %v1797_v58  ;;  %3389 = vpow2.f32 %v1840_v49 }
 0x31c   : > { %v1799_v61 = vpop.xlane.xlu0 %1798  ;;  %1862 = vadd.xlane.f32.xlu0 %v4151_v59  ;;  %v4157_v9 = vpop.eup %3381  ;;  %3099 = vmatprep.subr.bf16.mxu1 %v1954_v48 }
 0x31d   : > { %3391 = vpow2.f32 %v1842_v60  ;;  %v1844_v25 = vmul.f32 1.442695, %v1821_v28  ;;  %v1822_v7 = vsub.f32 %v4107_v31, %v1799_v61  ;;  %3100 = vmatpush3.bf16.msra.mxu1 %v1954_v48  ;;  %v3376_v48 = vld [vmem:[%s3845_s0 + $0x10] ss:$8 sps:$4 sm:$0xff]  }
 0x31e   : > { %v1801_v10 = vpop.xlane.xlu1 %1800 }
 0x31f   : > { %v4160_v18 = vpop.eup %3383  ;;  %v1846_v20 = vmul.f32 1.442695, %v1822_v7  ;;  %v1823_v27 = vsub.f32 %v4112_v36, %v1801_v10  ;;  %3393 = vpow2.f32 %v1844_v25  ;;  %v3013_v36 = vpop.f32.mrb[39].mxu0 }
 0x320   : > { %v1803_v35 = vpop.xlane.xlu0 %1802  ;;  %1866 = vadd.xlane.f32.xlu0 %v4157_v9  ;;  %1864 = vadd.xlane.f32.xlu1 %v4160_v18  ;;  %v4166_v54 = vpop.eup %3385  ;;  %v3014_v29 = vadd.f32 %v3013_v36, %v3012_v53 }
 0x321   : > { %3395 = vpow2.f32 %v1846_v20  ;;  %v1848_v31 = vmul.f32 1.442695, %v1823_v27  ;;  %v1824_v50 = vsub.f32 %v4105_v30, %v1803_v35  ;;  %v1598_v30 = vadd.f32 %v3011_v52, %v4134_v44  ;;  %v3015_v12 = vpop.f32.mrb[40].mxu0  ;;  %v3375_v35 = vld [vmem:[%s3845_s0 + $0x4] ss:$8 sps:$4 sm:$0xff]  }
 0x322   : > { %v1805_v56 = vpop.xlane.xlu1 %1804  ;;  %v1601_v5 = vadd.f32 %v3014_v29, %v4134_v44  ;;  %v3016_v15 = vpop.f32.mrb[41].mxu0  ;;  %2143 = vmatprep.subr.bf16.mxu0 %v3375_v35 }
 0x323   : > { %v4168_v1 = vpop.eup %3387  ;;  %v1850_v4 = vmul.f32 1.442695, %v1824_v50  ;;  %v1825_v8 = vsub.f32 %v4110_v34, %v1805_v56  ;;  %3397 = vpow2.f32 %v1848_v31  ;;  %v3017_v21 = vadd.f32 %v3016_v15, %v3015_v12  ;;  %v3018_v22 = vpop.f32.mrb[42].mxu0  ;;  %2144 = vmatpush1.bf16.msra.mxu0 %v3373_v32 }
 0x324   : > { %1870 = vadd.xlane.f32.xlu0 %v4168_v1  ;;  %v1807_v13 = vpop.xlane.xlu0 %1806  ;;  %1868 = vadd.xlane.f32.xlu1 %v4166_v54  ;;  %v1955_v17 = vpack.c.bf16 %v1601_v5, %v1598_v30 }
 0x325   : > { %3399 = vpow2.f32 %v1850_v4  ;;  %v1852_v33 = vmul.f32 1.442695, %v1825_v8  ;;  %v1826_v37 = vsub.f32 %v4119_v40, %v1807_v13  ;;  %v4175_v0 = vpop.eup %3389  ;;  %2145 = vmatprep.subr.bf16.mxu0 %v3378_v38 }
 0x326   : > { %v1809_v3 = vpop.xlane.xlu1 %1808  ;;  %3101 = vmatprep.subr.bf16.mxu1 %v1955_v17 }
 0x327   : > { %v4178_v34 = vpop.eup %3391  ;;  %v1854_v6 = vmul.f32 1.442695, %v1826_v37  ;;  %v1827_v11 = vsub.f32 %v4124_v42, %v1809_v3  ;;  %3401 = vpow2.f32 %v1852_v33  ;;  %v3019_v42 = vpop.f32.mrb[43].mxu0  ;;  %3102 = vmatpush3.bf16.msra.mxu1 %v1955_v17  ;;  %2146 = vmatpush1.bf16.msra.mxu0 %v3376_v48 }
 0x328   : > { %1874 = vadd.xlane.f32.xlu0 %v4178_v34  ;;  %v1811_v14 = vpop.xlane.xlu0 %1810  ;;  %1872 = vadd.xlane.f32.xlu1 %v4175_v0  ;;  %v3020_v46 = vadd.f32 %v3019_v42, %v3018_v22 }
 0x329   : > { %3403 = vpow2.f32 %v1854_v6  ;;  %v1856_v40 = vmul.f32 1.442695, %v1827_v11  ;;  %v1828_v19 = vsub.f32 %v4117_v39, %v1811_v14  ;;  %v4184_v23 = vpop.eup %3393  ;;  %v1606_v39 = vadd.f32 %v3017_v21, %v4134_v44 }
 0x32a   : > { %v1813_v43 = vpop.xlane.xlu1 %1812  ;;  %v1609_v51 = vadd.f32 %v3020_v46, %v4134_v44 }
 0x32b   : > { %v4186_v24 = vpop.eup %3395  ;;  %v1858_v45 = vmul.f32 1.442695, %v1828_v19  ;;  %v1829_v2 = vsub.f32 %v4122_v41, %v1813_v43  ;;  %3405 = vpow2.f32 %v1856_v40  ;;  %v3021_v41 = vpop.f32.mrb[44].mxu0 }
 0x32c   : > { %1878 = vadd.xlane.f32.xlu0 %v4186_v24  ;;  %1876 = vadd.xlane.f32.xlu1 %v4184_v23  ;;  %v1956_v57 = vpack.c.bf16 %v1609_v51, %v1606_v39  ;;  %v3022_v58 = vpop.f32.mrb[45].mxu0 }
 0x32d   : > { %3407 = vpow2.f32 %v1858_v45  ;;  %v1860_v47 = vmul.f32 1.442695, %v1829_v2  ;;  %v4192_v49 = vpop.eup %3397  ;;  %v3024_v60 = vpop.f32.mrb[46].mxu0  ;;  %v3023_v62 = vadd.f32 %v3022_v58, %v3021_v41 }
 0x32e   : > { %3103 = vmatprep.subr.bf16.mxu1 %v1956_v57  ;;  %v3025_v61 = vpop.f32.mrb[47].mxu0 }
 0x32f   : > { %v4195_v55 = vpop.eup %3399  ;;  %3409 = vpow2.f32 %v1860_v47  ;;  %3104 = vmatpush3.bf16.msra.mxu1 %v1956_v57  ;;  %v3026_v63 = vadd.f32 %v3025_v61, %v3024_v60  ;;  %v1614_v7 = vadd.f32 %v3023_v62, %v4134_v44 }
 0x330   : > { %1882 = vadd.xlane.f32.xlu0 %v4195_v55  ;;  %1880 = vadd.xlane.f32.xlu1 %v4192_v49 }
 0x331   : > { %v4199_v26 = vpop.eup %3401  ;;  %v1617_v10 = vadd.f32 %v3026_v63, %v4134_v44 }
 0x333   : > { %v4201_v28 = vpop.eup %3403  ;;  %v1957_v20 = vpack.c.bf16 %v1617_v10, %v1614_v7 }
 0x334   : > { %1886 = vadd.xlane.f32.xlu0 %v4201_v28  ;;  %1884 = vadd.xlane.f32.xlu1 %v4199_v26 }
 0x335   : > { %v4205_v25 = vpop.eup %3405  ;;  %3105 = vmatprep.subr.bf16.mxu1 %v1957_v20 }
 0x336   : > { %3106 = vmatpush3.bf16.msra.mxu1 %v1957_v20 }
 0x337   : > { %v4209_v16 = vpop.eup %3407 }
 0x338   : > { %1890 = vadd.xlane.f32.xlu0 %v4209_v16  ;;  %1888 = vadd.xlane.f32.xlu1 %v4205_v25 }
 0x339   : > { %v4213_v27 = vpop.eup %3409 }
 0x33c   : > { %1892 = vadd.xlane.f32.xlu1 %v4213_v27 }
 0x3a9   : > { %v1863_v44 = vpop.xlane.xlu0 %1862 }
 0x3aa   : > { %3411 = vrcp.f32 %v1863_v44 }
 0x3ad   : > { %v1867_v31 = vpop.xlane.xlu0 %1866  ;;  %v1865_v50 = vpop.xlane.xlu1 %1864 }
 0x3ae   : > { %3413 = vrcp.f32 %v1867_v31 }
 0x3af   : > { %3415 = vrcp.f32 %v1865_v50 }
 0x3b1   : > { %v1871_v52 = vpop.xlane.xlu0 %1870  ;;  %v1869_v53 = vpop.xlane.xlu1 %1868 }
 0x3b2   : > { %3417 = vrcp.f32 %v1871_v52 }
 0x3b3   : > { %3419 = vrcp.f32 %v1869_v53 }
 0x3b4   : > { %v3412_v56 = vpop.eup %3411 }
 0x3b5   : > { %v1875_v36 = vpop.xlane.xlu0 %1874  ;;  %v1873_v4 = vpop.xlane.xlu1 %1872  ;;  %v1910_v8 = vmul.f32 %v3412_v56, %v4151_v59 }
 0x3b6   : > { %3421 = vrcp.f32 %v1875_v36 }
 0x3b7   : > { %3423 = vrcp.f32 %v1873_v4  ;;  %1926 = vst [vmem:[%s3849_s5] sm:$0xff] %v1910_v8 }
 0x3b8   : > { %v3414_v13 = vpop.eup %3413 }
 0x3b9   : > { %v3416_v30 = vpop.eup %3415  ;;  %v1912_v29 = vmul.f32 %v3414_v13, %v4157_v9  ;;  %v1879_v33 = vpop.xlane.xlu0 %1878 }
 0x3ba   : > { %v1877_v37 = vpop.xlane.xlu1 %1876  ;;  %3425 = vrcp.f32 %v1879_v33  ;;  %v1911_v3 = vmul.f32 %v3416_v30, %v4160_v18 }
 0x3bb   : > { %1928 = vst [vmem:[%s3849_s5 + $0x10] sm:$0xff] %v1912_v29  ;;  %3427 = vrcp.f32 %v1877_v37 }
 0x3bc   : > { %v3418_v5 = vpop.eup %3417  ;;  %1927 = vst [vmem:[%s3849_s5 + $0x8] sm:$0xff] %v1911_v3  ;;  %v1942_v6 = vpack.c.bf16 %v1911_v3, %v1910_v8 }
 0x3bd   : > { %v3420_v59 = vpop.eup %3419  ;;  %v1883_v11 = vpop.xlane.xlu0 %1882  ;;  %v1914_v14 = vmul.f32 %v3418_v5, %v4168_v1 }
 0x3be   : > { %v1881_v12 = vpop.xlane.xlu1 %1880  ;;  %v1913_v15 = vmul.f32 %v3420_v59, %v4166_v54  ;;  %3429 = vrcp.f32 %v1883_v11  ;;  %3107 = vmatprep.mubr.bf16.mxu1 %v1942_v6  ;;  %v2055_v59 = vld [vmem:[#allocation2] sm:$0xff]  ;;  %v2056_v11 = vld [vmem:[#allocation2 + $0x8] sm:$0xff] }
 0x3bf   : > { %3431 = vrcp.f32 %v1881_v12  ;;  %1930 = vst [vmem:[%s3849_s5 + $0x20] sm:$0xff] %v1914_v14 }
 0x3c0   : > { %v3422_v9 = vpop.eup %3421  ;;  %1929 = vst [vmem:[%s3849_s5 + $0x18] sm:$0xff] %v1913_v15  ;;  %v1943_v18 = vpack.c.bf16 %v1913_v15, %v1912_v29 }
 0x3c1   : > { %v3424_v17 = vpop.eup %3423  ;;  %v1887_v40 = vpop.xlane.xlu0 %1886  ;;  %v1916_v21 = vmul.f32 %v3422_v9, %v4178_v34 }
 0x3c2   : > { %v1885_v19 = vpop.xlane.xlu1 %1884  ;;  %3433 = vrcp.f32 %v1887_v40  ;;  %3108 = vmatmul.mubr.bf16.vlgmr.msra.gmra.mrb[64].mxu1 %v1943_v18  ;;  %v1915_v1 = vmul.f32 %v3424_v17, %v4175_v0  ;;  %v2058_v18 = vld [vmem:[#allocation2 + $0x18] sm:$0xff] }
 0x3c3   : > { %3435 = vrcp.f32 %v1885_v19  ;;  %1932 = vst [vmem:[%s3849_s5 + $0x30] sm:$0xff] %v1916_v21 }
 0x3c4   : > { %v3426_v54 = vpop.eup %3425  ;;  %1931 = vst [vmem:[%s3849_s5 + $0x28] sm:$0xff] %v1915_v1  ;;  %v1944_v22 = vpack.c.bf16 %v1915_v1, %v1914_v14  ;;  %v2057_v14 = vld [vmem:[#allocation2 + $0x10] sm:$0xff] }
 0x3c5   : > { %v3428_v43 = vpop.eup %3427  ;;  %v1891_v42 = vpop.xlane.xlu0 %1890  ;;  %v1918_v2 = vmul.f32 %v3426_v54, %v4186_v24  ;;  %v2059_v54 = vld [vmem:[#allocation2 + $0x20] sm:$0xff] }
 0x3c6   : > { %v1889_v45 = vpop.xlane.xlu1 %1888  ;;  %3437 = vrcp.f32 %v1891_v42  ;;  %3111 = vmatprep.mubr.bf16.mxu1 %v1944_v22  ;;  %v1917_v34 = vmul.f32 %v3428_v43, %v4184_v23  ;;  %v2060_v22 = vld [vmem:[#allocation2 + $0x28] sm:$0xff]  ;;  %v2061_v42 = vld [vmem:[#allocation2 + $0x30] sm:$0xff] }
 0x3c7   : > { %3439 = vrcp.f32 %v1889_v45  ;;  %1934 = vst [vmem:[%s3849_s5 + $0x40] sm:$0xff] %v1918_v2 }
 0x3c8   : > { %v3430_v0 = vpop.eup %3429  ;;  %1933 = vst [vmem:[%s3849_s5 + $0x38] sm:$0xff] %v1917_v34  ;;  %v1945_v39 = vpack.c.bf16 %v1917_v34, %v1916_v21  ;;  %v2062_v34 = vld [vmem:[#allocation2 + $0x38] sm:$0xff] }
 0x3c9   : > { %v3432_v46 = vpop.eup %3431  ;;  %v1920_v51 = vmul.f32 %v3430_v0, %v4195_v55 }
 0x3ca   : > { %v1893_v47 = vpop.xlane.xlu1 %1892  ;;  %3112 = vmatmul.mubr.bf16.gmra.mrb[68].mxu1 %v1945_v39  ;;  %v1919_v24 = vmul.f32 %v3432_v46, %v4192_v49 }
 0x3cb   : > { %3441 = vrcp.f32 %v1893_v47  ;;  %1936 = vst [vmem:[%s3849_s5 + $0x50] sm:$0xff] %v1920_v51 }
 0x3cc   : > { %v3434_v41 = vpop.eup %3433  ;;  %1935 = vst [vmem:[%s3849_s5 + $0x48] sm:$0xff] %v1919_v24  ;;  %v1946_v23 = vpack.c.bf16 %v1919_v24, %v1918_v2  ;;  %v2063_v24 = vld [vmem:[#allocation2 + $0x40] sm:$0xff] }
 0x3cd   : > { %v3436_v57 = vpop.eup %3435  ;;  %v1922_v58 = vmul.f32 %v3434_v41, %v4201_v28  ;;  %v2064_v41 = vld [vmem:[#allocation2 + $0x48] sm:$0xff] }
 0x3ce   : > { %3115 = vmatprep.mubr.bf16.mxu1 %v1946_v23  ;;  %v1921_v60 = vmul.f32 %v3436_v57, %v4199_v26  ;;  %v3596_v26 = vmov 0   ;;  %v2065_v57 = vld [vmem:[#allocation2 + $0x50] sm:$0xff] }
 0x3cf   : > { %1938 = vst [vmem:[%s3849_s5 + $0x60] sm:$0xff] %v1922_v58  ;;  %2175 = vmatprep.mubr.bf16.mxu0 %v3596_v26 }
 0x3d0   : > { %v3438_v61 = vpop.eup %3437  ;;  %1937 = vst [vmem:[%s3849_s5 + $0x58] sm:$0xff] %v1921_v60  ;;  %v1947_v55 = vpack.c.bf16 %v1921_v60, %v1920_v51 }
 0x3d1   : > { %v3440_v62 = vpop.eup %3439  ;;  %v1924_v49 = vmul.f32 %v3438_v61, %v4209_v16  ;;  %v2066_v61 = vld [vmem:[#allocation2 + $0x58] sm:$0xff] }
 0x3d2   : > { %3116 = vmatmul.mubr.bf16.gmra.mrb[72].mxu1 %v1947_v55  ;;  %v1923_v63 = vmul.f32 %v3440_v62, %v4205_v25 }
 0x3d3   : > { %1940 = vst [vmem:[%s3849_s5 + $0x70] sm:$0xff] %v1924_v49 }
 0x3d4   : > { %1939 = vst [vmem:[%s3849_s5 + $0x68] sm:$0xff] %v1923_v63  ;;  %v1948_v10 = vpack.c.bf16 %v1923_v63, %v1922_v58 }
 0x3d5   : > { %v3442_v7 = vpop.eup %3441 }
 0x3d6   : > { %v1925_v28 = vmul.f32 %v3442_v7, %v4213_v27  ;;  %3119 = vmatprep.mubr.bf16.mxu1 %v1948_v10  ;;  %v2067_v10 = vld [vmem:[#allocation2 + $0x60] sm:$0xff] }
 0x3d8   : > { %1941 = vst [vmem:[%s3849_s5 + $0x78] sm:$0xff] %v1925_v28  ;;  %v1949_v20 = vpack.c.bf16 %v1925_v28, %v1924_v49  ;;  %v2068_v28 = vld [vmem:[#allocation2 + $0x68] sm:$0xff] }
 0x3da   : > { %3120 = vmatmul.mubr.bf16.gmra.mrb[76].mxu1 %v1949_v20 }
 0x495   : > { %v3109_v32 = vpop.f32.mrb[64].mxu1 }
 0x496   : > { %v1992_v35 = vpop.f32.mrb[65].mxu1 }
 0x497   : > { %v3110_v38 = vpop.f32.mrb[66].mxu1 }
 0x498   : > { %v2088_v48 = vpack.c.bf16 %v3110_v38, %v3109_v32  ;;  %v1995_v16 = vpop.f32.mrb[67].mxu1  ;;  %v2070_v38 = vld [vmem:[#allocation2 + $0x78] sm:$0xff] }
 0x499   : > { %v2087_v44 = vpack.c.bf16 %v1995_v16, %v1992_v35 }
 0x49b   : > { %2809 = vmatmul.mubr.msk.bf16.vlgmr.msra.gmra.mrb[48].mxu0 %vm1636_vm0, %v2087_v44 }
 0x49c   : > { %2185 = vmatprep.mubr.bf16.mxu0 %v3596_v26 }
 0x49d   : > { %v3113_v25 = vpop.f32.mrb[68].mxu1 }
 0x49e   : > { %v2008_v31 = vpop.f32.mrb[69].mxu1 }
 0x49f   : > { %v3114_v50 = vpop.f32.mrb[70].mxu1 }
 0x4a0   : > { %v2090_v52 = vpack.c.bf16 %v3114_v50, %v3113_v25  ;;  %v2011_v27 = vpop.f32.mrb[71].mxu1  ;;  %v2071_v50 = vld [vmem:[#allocation2 + $0x80] sm:$0xff] }
 0x4a1   : > { %v2089_v53 = vpack.c.bf16 %v2011_v27, %v2008_v31 }
 0x4a3   : > { %2810 = vmatmul.mubr.msk.bf16.gmra.mrb[52].mxu0 %vm1636_vm0, %v2088_v48 }
 0x4a4   : > { %2195 = vmatprep.mubr.bf16.mxu0 %v3596_v26 }
 0x4a5   : > { %v3117_v56 = vpop.f32.mrb[72].mxu1 }
 0x4a6   : > { %v2024_v36 = vpop.f32.mrb[73].mxu1 }
 0x4a7   : > { %v3118_v4 = vpop.f32.mrb[74].mxu1 }
 0x4a8   : > { %v2092_v8 = vpack.c.bf16 %v3118_v4, %v3117_v56  ;;  %v2027_v13 = vpop.f32.mrb[75].mxu1  ;;  %v2074_v4 = vld [vmem:[#allocation2 + $0x98] sm:$0xff] }
 0x4a9   : > { %v2091_v30 = vpack.c.bf16 %v2027_v13, %v2024_v36 }
 0x4ab   : > { %2811 = vmatmul.mubr.msk.bf16.gmra.mrb[56].mxu0 %vm1636_vm0, %v2089_v53  ;;  %v2073_v53 = vld [vmem:[#allocation2 + $0x90] sm:$0xff] }
 0x4ac   : > { %2205 = vmatprep.mubr.bf16.mxu0 %v3596_v26 }
 0x4ad   : > { %v3121_v29 = vpop.f32.mrb[76].mxu1 }
 0x4ae   : > { %v2040_v33 = vpop.f32.mrb[77].mxu1 }
 0x4af   : > { %v3122_v37 = vpop.f32.mrb[78].mxu1 }
 0x4b0   : > { %v2094_v3 = vpack.c.bf16 %v3122_v37, %v3121_v29  ;;  %v2043_v5 = vpop.f32.mrb[79].mxu1  ;;  %v2075_v37 = vld [vmem:[#allocation2 + $0xa0] sm:$0xff] }
 0x4b1   : > { %v2093_v6 = vpack.c.bf16 %v2043_v5, %v2040_v33 }
 0x4b3   : > { %2812 = vmatmul.mubr.msk.bf16.gmra.mrb[60].mxu0 %vm1636_vm0, %v2090_v52  ;;  %v2072_v52 = vld [vmem:[#allocation2 + $0x88] sm:$0xff] }
 0x4b4   : > { %2215 = vmatprep.mubr.bf16.mxu0 %v3596_v26 }
 0x4bb   : > { %2813 = vmatmul.mubr.msk.bf16.gmra.mrb[64].mxu0 %vm1636_vm0, %v2091_v30 }
 0x4bc   : > { %2225 = vmatprep.mubr.bf16.mxu0 %v3596_v26 }
 0x4c3   : > { %2814 = vmatmul.mubr.msk.bf16.gmra.mrb[68].mxu0 %vm1636_vm0, %v2092_v8 }
 0x4c4   : > { %2235 = vmatprep.mubr.bf16.mxu0 %v3596_v26 }
 0x4cb   : > { %2815 = vmatmul.mubr.msk.bf16.gmra.mrb[72].mxu0 %vm1636_vm0, %v2093_v6  ;;  %v2077_v6 = vld [vmem:[#allocation2 + $0xb0] sm:$0xff] }
 0x4cc   : > { %2245 = vmatprep.mubr.bf16.mxu0 %v3596_v26  ;;  %v2069_v26 = vld [vmem:[#allocation2 + $0x70] sm:$0xff] }
 0x4d3   : > { %2816 = vmatmul.mubr.msk.bf16.gmra.mrb[76].mxu0 %vm1636_vm0, %v2094_v3  ;;  %v2076_v3 = vld [vmem:[#allocation2 + $0xa8] sm:$0xff] }
 0x56e   : > { %v2177_v12 = vpop.f32.mrb[48].mxu0 }
 0x56f   : > { %v2256_v15 = vadd.f32 %v2177_v12, %v2055_v59  ;;  %v2179_v9 = vpop.f32.mrb[49].mxu0  ;;  %v2078_v12 = vld [vmem:[#allocation2 + $0xb8] sm:$0xff] }
 0x570   : > { %v2257_v17 = vadd.f32 %v2179_v9, %v2056_v11  ;;  %v2181_v40 = vpop.f32.mrb[50].mxu0 }
 0x571   : > { %2288 = vst [vmem:[#allocation2] sm:$0xff] %v2256_v15  ;;  %v2258_v19 = vadd.f32 %v2181_v40, %v2057_v14  ;;  %v2183_v21 = vpop.f32.mrb[51].mxu0  ;;  %v2079_v40 = vld [vmem:[#allocation2 + $0xc0] sm:$0xff] }
 0x572   : > { %2289 = vst [vmem:[#allocation2 + $0x8] sm:$0xff] %v2257_v17  ;;  %v2259_v1 = vadd.f32 %v2183_v21, %v2058_v18 }
 0x573   : > { %2290 = vst [vmem:[#allocation2 + $0x10] sm:$0xff] %v2258_v19  ;;  %v2080_v19 = vld [vmem:[#allocation2 + $0xc8] sm:$0xff] }
 0x574   : > { %2291 = vst [vmem:[#allocation2 + $0x18] sm:$0xff] %v2259_v1  ;;  %v2081_v1 = vld [vmem:[#allocation2 + $0xd0] sm:$0xff] }
 0x576   : > { %v2187_v43 = vpop.f32.mrb[52].mxu0 }
 0x577   : > { %v2260_v45 = vadd.f32 %v2187_v43, %v2059_v54  ;;  %v2189_v2 = vpop.f32.mrb[53].mxu0  ;;  %v2082_v43 = vld [vmem:[#allocation2 + $0xd8] sm:$0xff] }
 0x578   : > { %v2261_v0 = vadd.f32 %v2189_v2, %v2060_v22  ;;  %v2191_v39 = vpop.f32.mrb[54].mxu0 }
 0x579   : > { %2292 = vst [vmem:[#allocation2 + $0x20] sm:$0xff] %v2260_v45  ;;  %v2262_v46 = vadd.f32 %v2191_v39, %v2061_v42  ;;  %v2193_v47 = vpop.f32.mrb[55].mxu0  ;;  %v2083_v39 = vld [vmem:[#allocation2 + $0xe0] sm:$0xff] }
 0x57a   : > { %2293 = vst [vmem:[#allocation2 + $0x28] sm:$0xff] %v2261_v0  ;;  %v2263_v51 = vadd.f32 %v2193_v47, %v2062_v34 }
 0x57b   : > { %2294 = vst [vmem:[#allocation2 + $0x30] sm:$0xff] %v2262_v46  ;;  %v2084_v46 = vld [vmem:[#allocation2 + $0xe8] sm:$0xff] }
 0x57c   : > { %2295 = vst [vmem:[#allocation2 + $0x38] sm:$0xff] %v2263_v51  ;;  %v2085_v51 = vld [vmem:[#allocation2 + $0xf0] sm:$0xff] }
 0x57e   : > { %v2197_v23 = vpop.f32.mrb[56].mxu0 }
 0x57f   : > { %v2264_v58 = vadd.f32 %v2197_v23, %v2063_v24  ;;  %v2199_v60 = vpop.f32.mrb[57].mxu0  ;;  %v2086_v23 = vld [vmem:[#allocation2 + $0xf8] sm:$0xff] }
 0x580   : > { %v2265_v55 = vadd.f32 %v2199_v60, %v2064_v41  ;;  %v2201_v62 = vpop.f32.mrb[58].mxu0 }
 0x581   : > { %2296 = vst [vmem:[#allocation2 + $0x40] sm:$0xff] %v2264_v58  ;;  %v2266_v49 = vadd.f32 %v2201_v62, %v2065_v57  ;;  %v2203_v63 = vpop.f32.mrb[59].mxu0  ;;  %v2358_v62 = vlaneseq (!%p2817_p8) }
 0x582   : > { %2297 = vst [vmem:[#allocation2 + $0x48] sm:$0xff] %v2265_v55  ;;  %v2267_v7 = vadd.f32 %v2203_v63, %v2066_v61 }
 0x583   : > { %2298 = vst [vmem:[#allocation2 + $0x50] sm:$0xff] %v2266_v49  ;;  %v2356_v49 = vld [vmem:[%s4517_s18] sm:$0x3] (!%p2817_p8)  ;;  %v2359_v63 = vshrl.u32 (!%p2817_p8), %v2358_v62, 7 }
 0x584   : > { %2299 = vst [vmem:[#allocation2 + $0x58] sm:$0xff] %v2267_v7  ;;  %v2324_v7 = vld [vmem:[#allocation2] sm:$0xff] (!%p2817_p8) }
 0x586   : > { %v2207_v20 = vpop.f32.mrb[60].mxu0 }
 0x587   : > { %v2268_v32 = vadd.f32 %v2207_v20, %v2067_v10  ;;  %v2209_v35 = vpop.f32.mrb[61].mxu0  ;;  %v2325_v10 = vld [vmem:[#allocation2 + $0x8] sm:$0xff] (!%p2817_p8)  ;;  %v2327_v20 = vld [vmem:[#allocation2 + $0x18] sm:$0xff] (!%p2817_p8) }
 0x588   : > { %v2269_v48 = vadd.f32 %v2209_v35, %v2068_v28  ;;  %v2211_v16 = vpop.f32.mrb[62].mxu0  ;;  %v2326_v28 = vld [vmem:[#allocation2 + $0x10] sm:$0xff] (!%p2817_p8)  ;;  %v2328_v35 = vld [vmem:[#allocation2 + $0x20] sm:$0xff] (!%p2817_p8) }
 0x589   : > { %2300 = vst [vmem:[#allocation2 + $0x60] sm:$0xff] %v2268_v32  ;;  %v2270_v44 = vadd.f32 %v2211_v16, %v2069_v26  ;;  %v2213_v25 = vpop.f32.mrb[63].mxu0  ;;  %v2360_v26 = vsub.s32 (!%p2817_p8), 0, %v2359_v63  ;;  %v2364_v32 = vsub.s32 (!%p2817_p8), 1, %v2359_v63  ;;  %v2331_v16 = vld [vmem:[#allocation2 + $0x38] sm:$0xff] (!%p2817_p8) }
 0x58a   : > { %2301 = vst [vmem:[#allocation2 + $0x68] sm:$0xff] %v2269_v48  ;;  %v2271_v31 = vadd.f32 %v2213_v25, %v2070_v38  ;;  %v2329_v38 = vld [vmem:[#allocation2 + $0x28] sm:$0xff] (!%p2817_p8)  ;;  %v2330_v48 = vld [vmem:[#allocation2 + $0x30] sm:$0xff] (!%p2817_p8) }
 0x58b   : > { %2302 = vst [vmem:[#allocation2 + $0x70] sm:$0xff] %v2270_v44  ;;  %v2332_v44 = vld [vmem:[#allocation2 + $0x40] sm:$0xff] (!%p2817_p8)  ;;  %v2333_v25 = vld [vmem:[#allocation2 + $0x48] sm:$0xff] (!%p2817_p8) }
 0x58c   : > { %2303 = vst [vmem:[#allocation2 + $0x78] sm:$0xff] %v2271_v31  ;;  %v2334_v31 = vld [vmem:[#allocation2 + $0x50] sm:$0xff] (!%p2817_p8) }
 0x58e   : > { %v2217_v27 = vpop.f32.mrb[64].mxu0 }
 0x58f   : > { %v2272_v56 = vadd.f32 %v2217_v27, %v2071_v50  ;;  %v2219_v36 = vpop.f32.mrb[65].mxu0  ;;  %v4264_v50 = vrot.slane (!%p2817_p8), %v2356_v49, %v2360_v26  ;;  %v2335_v27 = vld [vmem:[#allocation2 + $0x58] sm:$0xff] (!%p2817_p8) }
 0x590   : > { %v2273_v8 = vadd.f32 %v2219_v36, %v2072_v52  ;;  %v2221_v13 = vpop.f32.mrb[66].mxu0  ;;  %v4266_v52 = vrot.slane (!%p2817_p8), %v2356_v49, %v2364_v32 }
 0x591   : > { %2304 = vst [vmem:[#allocation2 + $0x80] sm:$0xff] %v2272_v56  ;;  %v2274_v30 = vadd.f32 %v2221_v13, %v2073_v53  ;;  %v2223_v29 = vpop.f32.mrb[67].mxu0  ;;  %v2336_v53 = vld [vmem:[#allocation2 + $0x60] sm:$0xff] (!%p2817_p8)  ;;  %v2337_v56 = vld [vmem:[#allocation2 + $0x68] sm:$0xff] (!%p2817_p8)  ;;  %v2368_v13 = vadd.f32 (!%p2817_p8), %v4264_v50, %v2324_v7 }
 0x592   : > { %2305 = vst [vmem:[#allocation2 + $0x88] sm:$0xff] %v2273_v8  ;;  %v2275_v33 = vadd.f32 %v2223_v29, %v2074_v4  ;;  %v2338_v36 = vld [vmem:[#allocation2 + $0x70] sm:$0xff] (!%p2817_p8)  ;;  %v2370_v29 = vadd.f32 (!%p2817_p8), %v4264_v50, %v2326_v28 }
 0x593   : > { %2306 = vst [vmem:[#allocation2 + $0x90] sm:$0xff] %v2274_v30  ;;  %v2339_v4 = vld [vmem:[#allocation2 + $0x78] sm:$0xff] (!%p2817_p8)  ;;  %v2369_v30 = vadd.f32 (!%p2817_p8), %v4266_v52, %v2325_v10  ;;  %2400 = vst [vmem:[%s3847_s22] sm:$0xff] (!%p2817_p8), %v2368_v13 }
 0x594   : > { %2307 = vst [vmem:[#allocation2 + $0x98] sm:$0xff] %v2275_v33  ;;  %v2371_v33 = vadd.f32 (!%p2817_p8), %v4266_v52, %v2327_v20  ;;  %2402 = vst [vmem:[%s3847_s22 + $0x10] sm:$0xff] (!%p2817_p8), %v2370_v29 }
 0x595   : > { %2401 = vst [vmem:[%s3847_s22 + $0x8] sm:$0xff] (!%p2817_p8), %v2369_v30 }
 0x596   : > { %v2227_v5 = vpop.f32.mrb[68].mxu0  ;;  %2403 = vst [vmem:[%s3847_s22 + $0x18] sm:$0xff] (!%p2817_p8), %v2371_v33 }
 0x597   : > { %v2276_v59 = vadd.f32 %v2227_v5, %v2075_v37  ;;  %v2229_v11 = vpop.f32.mrb[69].mxu0 }
 0x598   : > { %v2277_v14 = vadd.f32 %v2229_v11, %v2076_v3  ;;  %v2231_v15 = vpop.f32.mrb[70].mxu0  ;;  %v2340_v8 = vld [vmem:[#allocation2 + $0x80] sm:$0xff] (!%p2817_p8)  ;;  %v2374_v11 = vadd.f32 (!%p2817_p8), %v4264_v50, %v2330_v48 }
 0x599   : > { %2308 = vst [vmem:[#allocation2 + $0xa0] sm:$0xff] %v2276_v59  ;;  %v2278_v9 = vadd.f32 %v2231_v15, %v2077_v6  ;;  %v2233_v18 = vpop.f32.mrb[71].mxu0  ;;  %v2341_v37 = vld [vmem:[#allocation2 + $0x88] sm:$0xff] (!%p2817_p8)  ;;  %v2372_v6 = vadd.f32 (!%p2817_p8), %v4264_v50, %v2328_v35  ;;  %v2373_v59 = vadd.f32 (!%p2817_p8), %v4266_v52, %v2329_v38 }
 0x59a   : > { %2309 = vst [vmem:[#allocation2 + $0xa8] sm:$0xff] %v2277_v14  ;;  %v2279_v17 = vadd.f32 %v2233_v18, %v2078_v12  ;;  %v2342_v3 = vld [vmem:[#allocation2 + $0x90] sm:$0xff] (!%p2817_p8)  ;;  %v2375_v12 = vadd.f32 (!%p2817_p8), %v4266_v52, %v2331_v16  ;;  %v2376_v18 = vadd.f32 (!%p2817_p8), %v4264_v50, %v2332_v44  ;;  %2406 = vst [vmem:[%s3847_s22 + $0x30] sm:$0xff] (!%p2817_p8), %v2374_v11 }
 0x59b   : > { %2310 = vst [vmem:[#allocation2 + $0xb0] sm:$0xff] %v2278_v9  ;;  %v2343_v5 = vld [vmem:[#allocation2 + $0x98] sm:$0xff] (!%p2817_p8)  ;;  %2404 = vst [vmem:[%s3847_s22 + $0x20] sm:$0xff] (!%p2817_p8), %v2372_v6 }
 0x59c   : > { %2311 = vst [vmem:[#allocation2 + $0xb8] sm:$0xff] %v2279_v17  ;;  %v2377_v17 = vadd.f32 (!%p2817_p8), %v4266_v52, %v2333_v25  ;;  %2405 = vst [vmem:[%s3847_s22 + $0x28] sm:$0xff] (!%p2817_p8), %v2373_v59 }
 0x59d   : > { %2407 = vst [vmem:[%s3847_s22 + $0x38] sm:$0xff] (!%p2817_p8), %v2375_v12  ;;  %2408 = vst [vmem:[%s3847_s22 + $0x40] sm:$0xff] (!%p2817_p8), %v2376_v18 }
 0x59e   : > { %v2237_v21 = vpop.f32.mrb[72].mxu0  ;;  %2409 = vst [vmem:[%s3847_s22 + $0x48] sm:$0xff] (!%p2817_p8), %v2377_v17 }
 0x59f   : > { %v2280_v54 = vadd.f32 %v2237_v21, %v2079_v40  ;;  %v2239_v22 = vpop.f32.mrb[73].mxu0  ;;  %v2378_v40 = vadd.f32 (!%p2817_p8), %v4264_v50, %v2334_v31 }
 0x5a0   : > { %v2281_v42 = vadd.f32 %v2239_v22, %v2080_v19  ;;  %v2241_v45 = vpop.f32.mrb[74].mxu0  ;;  %v2344_v14 = vld [vmem:[#allocation2 + $0xa0] sm:$0xff] (!%p2817_p8)  ;;  %v2379_v19 = vadd.f32 (!%p2817_p8), %v4266_v52, %v2335_v27  ;;  %v2380_v22 = vadd.f32 (!%p2817_p8), %v4264_v50, %v2336_v53 }
 0x5a1   : > { %2312 = vst [vmem:[#allocation2 + $0xc0] sm:$0xff] %v2280_v54  ;;  %v2282_v2 = vadd.f32 %v2241_v45, %v2081_v1  ;;  %v2243_v34 = vpop.f32.mrb[75].mxu0  ;;  %v2345_v15 = vld [vmem:[#allocation2 + $0xa8] sm:$0xff] (!%p2817_p8)  ;;  %v2383_v45 = vadd.f32 (!%p2817_p8), %v4266_v52, %v2339_v4  ;;  %2410 = vst [vmem:[%s3847_s22 + $0x50] sm:$0xff] (!%p2817_p8), %v2378_v40 }
 0x5a2   : > { %2313 = vst [vmem:[#allocation2 + $0xc8] sm:$0xff] %v2281_v42  ;;  %v2283_v0 = vadd.f32 %v2243_v34, %v2082_v43  ;;  %v2346_v9 = vld [vmem:[#allocation2 + $0xb0] sm:$0xff] (!%p2817_p8)  ;;  %v2381_v43 = vadd.f32 (!%p2817_p8), %v4266_v52, %v2337_v56  ;;  %v2382_v42 = vadd.f32 (!%p2817_p8), %v4264_v50, %v2338_v36  ;;  %2411 = vst [vmem:[%s3847_s22 + $0x58] sm:$0xff] (!%p2817_p8), %v2379_v19 }
 0x5a3   : > { %2314 = vst [vmem:[#allocation2 + $0xd0] sm:$0xff] %v2282_v2  ;;  %v2347_v21 = vld [vmem:[#allocation2 + $0xb8] sm:$0xff] (!%p2817_p8)  ;;  %2412 = vst [vmem:[%s3847_s22 + $0x60] sm:$0xff] (!%p2817_p8), %v2380_v22 }
 0x5a4   : > { %2315 = vst [vmem:[#allocation2 + $0xd8] sm:$0xff] %v2283_v0  ;;  %2413 = vst [vmem:[%s3847_s22 + $0x68] sm:$0xff] (!%p2817_p8), %v2381_v43 }
 0x5a5   : > { %2414 = vst [vmem:[%s3847_s22 + $0x70] sm:$0xff] (!%p2817_p8), %v2382_v42  ;;  %2415 = vst [vmem:[%s3847_s22 + $0x78] sm:$0xff] (!%p2817_p8), %v2383_v45 }
 0x5a6   : > { %v2247_v47 = vpop.f32.mrb[76].mxu0  ;;  %2323 = sbr.rel (%p2817_p8) target bundleno = 1463 (0x5b7), region = 72 }
 0x5a7   : > { %v2284_v24 = vadd.f32 %v2247_v47, %v2083_v39  ;;  %v2249_v41 = vpop.f32.mrb[77].mxu0  ;;  %v2384_v39 = vadd.f32 (!%p2817_p8), %v4264_v50, %v2340_v8  ;;  %v2386_v47 = vadd.f32 (!%p2817_p8), %v4264_v50, %v2342_v3 }
 0x5a8   : > { %v2285_v57 = vadd.f32 %v2249_v41, %v2084_v46  ;;  %v2251_v58 = vpop.f32.mrb[78].mxu0  ;;  %v2348_v1 = vld [vmem:[#allocation2 + $0xc0] sm:$0xff] (!%p2817_p8)  ;;  %v2385_v46 = vadd.f32 (!%p2817_p8), %v4266_v52, %v2341_v37 }
 0x5a9   : > { %2316 = vst [vmem:[#allocation2 + $0xe0] sm:$0xff] %v2284_v24  ;;  %v2286_v60 = vadd.f32 %v2251_v58, %v2085_v51  ;;  %v2253_v61 = vpop.f32.mrb[79].mxu0  ;;  %v2349_v54 = vld [vmem:[#allocation2 + $0xc8] sm:$0xff] (!%p2817_p8)  ;;  %v2387_v51 = vadd.f32 (!%p2817_p8), %v4266_v52, %v2343_v5  ;;  %v2389_v58 = vadd.f32 (!%p2817_p8), %v4266_v52, %v2345_v15  ;;  %2416 = vst [vmem:[%s3847_s22 + $0x80] sm:$0xff] (!%p2817_p8), %v2384_v39 }
 0x5aa   : > { %2317 = vst [vmem:[#allocation2 + $0xe8] sm:$0xff] %v2285_v57  ;;  %v2287_v55 = vadd.f32 %v2253_v61, %v2086_v23  ;;  %v2350_v2 = vld [vmem:[#allocation2 + $0xd0] sm:$0xff] (!%p2817_p8)  ;;  %v2388_v57 = vadd.f32 (!%p2817_p8), %v4264_v50, %v2344_v14  ;;  %v2391_v61 = vadd.f32 (!%p2817_p8), %v4266_v52, %v2347_v21  ;;  %2417 = vst [vmem:[%s3847_s22 + $0x88] sm:$0xff] (!%p2817_p8), %v2385_v46 }
 0x5ab   : > { %2318 = vst [vmem:[#allocation2 + $0xf0] sm:$0xff] %v2286_v60  ;;  %v2351_v34 = vld [vmem:[#allocation2 + $0xd8] sm:$0xff] (!%p2817_p8)  ;;  %v2390_v60 = vadd.f32 (!%p2817_p8), %v4264_v50, %v2346_v9  ;;  %2418 = vst [vmem:[%s3847_s22 + $0x90] sm:$0xff] (!%p2817_p8), %v2386_v47  ;;  %v2393_v62 = vadd.f32 (!%p2817_p8), %v4266_v52, %v2349_v54  ;;  %v2394_v49 = vadd.f32 (!%p2817_p8), %v4264_v50, %v2350_v2 }
 0x5ac   : > { %2319 = vst [vmem:[#allocation2 + $0xf8] sm:$0xff] %v2287_v55  ;;  %2419 = vst [vmem:[%s3847_s22 + $0x98] sm:$0xff] (!%p2817_p8), %v2387_v51  ;;  %v2392_v55 = vadd.f32 (!%p2817_p8), %v4264_v50, %v2348_v1  ;;  %v2395_v63 = vadd.f32 (!%p2817_p8), %v4266_v52, %v2351_v34 }
 0x5ad   : > { %2420 = vst [vmem:[%s3847_s22 + $0xa0] sm:$0xff] %v2388_v57  ;;  %2421 = vst [vmem:[%s3847_s22 + $0xa8] sm:$0xff] %v2389_v58 }
 0x5ae   : > { %2422 = vst [vmem:[%s3847_s22 + $0xb0] sm:$0xff] %v2390_v60  ;;  %2423 = vst [vmem:[%s3847_s22 + $0xb8] sm:$0xff] %v2391_v61 }
 0x5af   : > { %2424 = vst [vmem:[%s3847_s22 + $0xc0] sm:$0xff] %v2392_v55  ;;  %2425 = vst [vmem:[%s3847_s22 + $0xc8] sm:$0xff] %v2393_v62 }
 0x5b0   : > { %v2352_v0 = vld [vmem:[#allocation2 + $0xe0] sm:$0xff]  ;;  %2426 = vst [vmem:[%s3847_s22 + $0xd0] sm:$0xff] %v2394_v49  ;;  %2427 = vst [vmem:[%s3847_s22 + $0xd8] sm:$0xff] %v2395_v63 }
 0x5b1   : > { %v2353_v24 = vld [vmem:[#allocation2 + $0xe8] sm:$0xff]  ;;  %v2396_v7 = vadd.f32 %v4264_v50, %v2352_v0 }
 0x5b2   : > { %v2354_v41 = vld [vmem:[#allocation2 + $0xf0] sm:$0xff]  ;;  %v2397_v10 = vadd.f32 %v4266_v52, %v2353_v24 }
 0x5b3   : > { %v2355_v23 = vld [vmem:[#allocation2 + $0xf8] sm:$0xff]  ;;  %v2398_v28 = vadd.f32 %v4264_v50, %v2354_v41  ;;  %2428 = vst [vmem:[%s3847_s22 + $0xe0] sm:$0xff] %v2396_v7 }
 0x5b4   : > { %v2399_v20 = vadd.f32 %v4266_v52, %v2355_v23  ;;  %2429 = vst [vmem:[%s3847_s22 + $0xe8] sm:$0xff] %v2397_v10 }
 0x5b5   : > { %2430 = vst [vmem:[%s3847_s22 + $0xf0] sm:$0xff] %v2398_v28 }
 0x5b6   : > { %2431 = vst [vmem:[%s3847_s22 + $0xf8] sm:$0xff] %v2399_v20 }
 0x5b7 PF: > { %s4518_s14 = sld [smem:[#allocation13_spill]]  ;;  %s2834_s17 = sshll.u32 %s3581_s28, 12 }
 0x5b8   : > { %s4520_s23 = sld [smem:[#allocation33_spill]]  ;;  %s2451_s10 = sshll.u32 %s3847_s22, 4  ;;  %s4339_s10 = int_to_ptr.vmem [resolvable:$true] %s2451_s10 }
 0x5b9   : > { %s3443_s30 = scalar_lea.vmem %s4339_s10, 4096  ;;  %s3597_s0 = smov [#allocation3]  }
 0x5ba   : > { %p3444_p9 = scmp.ne.s32.totalorder %s4339_s10, %s3443_s30  ;;  %s3447_s1 = sshll.u32 %s3597_s0, 4  ;;  %s3448_s1 = int_to_ptr.vmem [resolvable:$false] %s3447_s1 }
 0x5bb   : > { %s3449_s21 = scalar_lea.vmem %s3448_s1, 8192  ;;  %p3450_p0 = scmp.lt.s32.totalorder %s4339_s10, %s3448_s1 }
 0x5bc   : > { %p3445_p10 = pnand %p3444_p9, %p3739_p3  ;;  %p3451_p1 = scmp.lt.s32.totalorder %s3449_s21, %s3443_s30 }
 0x5bd   : > { %s4522_s13 = sand.u32 1, %s4518_s14  }
 0x5be   : > { %s4521_s15 = smov %s4520_s23  ;;  %s4336_s29 = scalar_lea.hbm %s4520_s23, %s2834_s17 }
 0x5bf   : > { %s4343_s20 = scalar_lea.sflag [#allocation4], %s4522_s13  ;;  %p3446_p11 = pneg %p3445_p10 }
 0x5c0   : > { %p3452_p4 = por %p3451_p1, %p3450_p0 }
 0x5c2   : > { %p3453_p2 = pnand %p3452_p4, %p3446_p11 }
 0x5c4   : > { %3456 = shalt.err (!%p3453_p2)
}
 0x5c5   : > { %s3457_s22 = scalar_lea.hbm %s4336_s29, 4096  ;;  %s3461_s11 = scalar_lea.hbm %s4521_s15, 8192 }
 0x5c6   : > { %p3458_p5 = scmp.ne.s32.totalorder %s4336_s29, %s3457_s22  ;;  %p3462_p9 = scmp.lt.u32.totalorder %s4336_s29, %s4521_s15 }
 0x5c7   : > { %p3463_p10 = scmp.lt.u32.totalorder %s3461_s11, %s3457_s22  ;;  %p3465_p0 = scmp.lt.u32.totalorder %s3457_s22, %s4336_s29 }
 0x5c8   : > { %p3459_p6 = pnand %p3458_p5, %p3739_p3 }
 0x5c9   : > { %p3464_p11 = por %p3463_p10, %p3462_p9 }
 0x5ca   : > { %p3460_p8 = pneg %p3459_p6 }
 0x5cb   : > { %p3466_p1 = por %p3465_p0, %p3464_p11 }
 0x5cd   : > { %p3467_p4 = pnand %p3466_p1, %p3460_p8 }
 0x5cf   : > { %3470 = shalt.err (!%p3467_p4)
}
 0x5d0   : > { %s3598_s3 = smov 256   ;;  %s4523_s24 = sld [smem:[#allocation10_spill]] }
 0x5d1   : > { %s3599_s14 = smov 16   ;;  %s2822_s17 = sshll.u32 %s3577_s27, 4 }
 0x5d2   : > { %3147 = dma.vmem_to_hbm [thread:$0]  (%p3739_p3), %s4339_s10, 4096, %s4336_s29, %s4343_s20, %s3598_s3, %s3598_s3, %s3599_s14  }
 0x5d3   : > { %s2823_s26 = sshll.u32 %s3581_s28, 7  ;;  %s2469_s23 = sshll.u32 %s3849_s5, 4  ;;  %s4370_s23 = int_to_ptr.vmem [resolvable:$true] %s2469_s23 }
 0x5d4   : > { %s2466_s12 = sadd.s32 %s2823_s26, %s2822_s17  ;;  %s4525_s1 = sld [smem:[#allocation34_spill]] }
 0x5d5   : > { %s2824_s13 = sshll.u32 %s2466_s12, 7  ;;  %s3471_s19 = scalar_lea.vmem %s4370_s23, 2048 }
 0x5d6   : > { %s4526_s22 = sand.u32 1, %s4523_s24   ;;  %p3472_p3 = scmp.ne.s32.totalorder %s4370_s23, %s3471_s19 }
 0x5d7   : > { %s4379_s25 = scalar_lea.sflag [#allocation6], %s4526_s22  ;;  %s3600_s5 = smov [#allocation5]  }
 0x5d8   : > { %p3473_p2 = pnand %p3472_p3, %p3768_p12  ;;  %s3475_s27 = sshll.u32 %s3600_s5, 4  ;;  %s3476_s27 = int_to_ptr.vmem [resolvable:$false] %s3475_s27 }
 0x5d9   : > { %s3477_s28 = scalar_lea.vmem %s3476_s27, 4096  ;;  %p3478_p6 = scmp.lt.s32.totalorder %s4370_s23, %s3476_s27 }
 0x5da   : > { %s4375_s21 = scalar_lea.hbm %s4525_s1, %s2824_s13  ;;  %p3474_p5 = pneg %p3473_p2 }
 0x5db   : > { %p3479_p8 = scmp.lt.s32.totalorder %s3477_s28, %s3471_s19 }
 0x5dd   : > { %p3480_p9 = por %p3479_p8, %p3478_p6 }
 0x5df   : > { %p3481_p10 = pnand %p3480_p9, %p3474_p5 }
 0x5e1   : > { %3484 = shalt.err (!%p3481_p10)
}
 0x5e2   : > { %s3485_s29 = scalar_lea.hbm %s4375_s21, 2048  ;;  %s3489_s16 = scalar_lea.hbm %s4525_s1, 32768 }
 0x5e3   : > { %p3486_p11 = scmp.ne.s32.totalorder %s4375_s21, %s3485_s29  ;;  %p3490_p4 = scmp.lt.u32.totalorder %s4375_s21, %s4525_s1 }
 0x5e4   : > { %p3491_p3 = scmp.lt.u32.totalorder %s3489_s16, %s3485_s29  ;;  %p3493_p5 = scmp.lt.u32.totalorder %s3485_s29, %s4375_s21 }
 0x5e5   : > { %p3487_p0 = pnand %p3486_p11, %p3768_p12 }
 0x5e6   : > { %p3492_p2 = por %p3491_p3, %p3490_p4 }
 0x5e7   : > { %p3488_p1 = pneg %p3487_p0 }
 0x5e8   : > { %p3494_p6 = por %p3493_p5, %p3492_p2 }
 0x5ea   : > { %p3495_p8 = pnand %p3494_p6, %p3488_p1 }
 0x5ec   : > { %3498 = shalt.err (!%p3495_p8)
}
 0x5ed   : > { %s3601_s9 = smov 128   ;;  %s3602_s3 = smov 8  }
 0x5ee   : > { %3148 = dma.vmem_to_hbm [thread:$0]  (%p3768_p12), %s4370_s23, 2048, %s4375_s21, %s4379_s25, %s3601_s9, %s3601_s9, %s3602_s3  }
 0x5ef PF: > { %s4527_s24 = sld [smem:[#allocation17_spill]]  ;;  %s4528_s14 = sld [smem:[#allocation12_spill]] }
 0x5f5   : > { %p3158_p9 = scmp.ge.s32.totalorder %s4527_s24, 2  ;;  %s2484_s26 = sand.u32 1, %s4528_s14  }
 0x5f6   : > { %s2485_s12 = scalar_lea.sflag [#allocation4], %s2484_s26 }
 0x5f7   : > { %p3152_p10 = pnand %p3158_p9, %p3756_p7 }
 0x5f9   : > { %3544 = dma.done.wait (!%p3152_p10), %s2485_s12, 4096  }
 0x5fa   : > { %3546 = vsyncadd (!%p3152_p10), %s2485_s12, 4294963200  ;;  %s4530_s13 = sld [smem:[#allocation9_spill]]  ;;  %p3155_p11 = pnand %p3158_p9, %p3780_p13 }
 0x600   : > { %s2493_s0 = sand.u32 1, %s4530_s13  }
 0x601   : > { %s2494_s22 = scalar_lea.sflag [#allocation6], %s2493_s0 }
 0x602   : > { %3548 = dma.done.wait (!%p3155_p11), %s2494_s22, 2048  }
 0x603   : > { %3550 = vsyncadd (!%p3155_p11), %s2494_s22, 4294965248  ;;  %s29_s13 = sadd.s32 1, %s4527_s24   ;;  %s4532_s21 = sld [smem:[#allocation10_spill]] }
 0x604   : > { %p26_p12 = scmp.ge.s32.totalorder %s29_s13, 18   ;;  %s4533_s22 = sld [smem:[#allocation11_spill]] }
 0x605   : > { %s4534_s23 = sld [smem:[#allocation24_spill]]  ;;  %s4535_s24 = sld [smem:[#allocation13_spill]] }
 0x606   : > { %s4536_s25 = sld [smem:[#allocation14_spill]]  ;;  %s4537_s26 = sld [smem:[#allocation23_spill]] }
 0x607   : > { %s4538_s27 = sld [smem:[#allocation15_spill]]  ;;  %s4539_s28 = sld [smem:[#allocation16_spill]] }
 0x608   : > { %s4540_s29 = sld [smem:[#allocation18_spill]]  ;;  %s4541_s30 = sld [smem:[#allocation20_spill]] }
 0x609   :  { %28 = sbr.rel (!%p26_p12) target bundleno = 19 (0x13), region = 151 }
 0x610   :  { %2499 = vsyncpa [#allocation4], 1 }
 0x611   :  { %2501 = vsyncpa [#allocation4 + $0x1], 1 }
 0x612   :  { %2502 = vsyncpa [#allocation6], 1 }
 0x613   :  { %2504 = vsyncpa [#allocation6 + $0x1], 1 }

</bundles_post_ra>
